<compile_context>
chip_gen: v5e
topology: v5e:2x2
jax: 0.10.0
libtpu: 0.0.40
codegen_flags: <defaults>
</compile_context>

<pallas_src>
import jax
import jax.numpy as jnp
from jax.experimental import pallas as pl
from jax.experimental.pallas import tpu as pltpu

EPS = 1e-5  # PyTorch InstanceNorm3d default eps (affine=False -> no params)


# ---------------------------------------------------------------------------
# Pallas kernels (each runs as a single grid step over full-array VMEM blocks)
# ---------------------------------------------------------------------------
def _instnorm_relu_kernel(x_ref, o_ref):
    """Rows = (c, n) pairs, cols = flattened spatial.  Biased var, eps inside rsqrt."""
    x = x_ref[...].astype(jnp.float32)
    mean = jnp.mean(x, axis=-1, keepdims=True)
    var = jnp.mean((x - mean) ** 2, axis=-1, keepdims=True)
    y = (x - mean) * jax.lax.rsqrt(var + EPS)
    o_ref[...] = jnp.maximum(y, 0.0).astype(o_ref.dtype)


def _conv_matmul_kernel(w_ref, p_ref, b_ref, o_ref):
    """out(Cout, M) = w(Cout, K) @ patches(K, M) + bias(Cout, 1).  bf16 in, f32 acc."""
    acc = jnp.dot(w_ref[...], p_ref[...], preferred_element_type=jnp.float32)
    o_ref[...] = (acc + b_ref[...]).astype(o_ref.dtype)


def _fused_conv_bypass_kernel(w2_ref, p2_ref, wb_ref, pb_ref, b_ref, o_ref):
    """Fused conv2 + bypass conv + combined bias + ReLU on one (Cout, M) tile."""
    acc = jnp.dot(w2_ref[...], p2_ref[...], preferred_element_type=jnp.float32)
    acc = acc + jnp.dot(wb_ref[...], pb_ref[...], preferred_element_type=jnp.float32)
    acc = acc + b_ref[...]
    o_ref[...] = jnp.maximum(acc, 0.0).astype(o_ref.dtype)


# ---------------------------------------------------------------------------
# Pallas wrappers
# ---------------------------------------------------------------------------
def _full_spec(shape):
    nd = len(shape)
    return pl.BlockSpec(shape, lambda i, _nd=nd: (0,) * _nd)


def instance_norm_relu_rows(x2d, out_dtype):
    """x2d: (rows, S) with one (n, c) instance per row -> InstanceNorm + ReLU."""
    rows, S = x2d.shape
    return pl.pallas_call(
        _instnorm_relu_kernel,
        out_shape=jax.ShapeDtypeStruct((rows, S), out_dtype),
        grid=(1,),
        in_specs=[_full_spec((rows, S))],
        out_specs=_full_spec((rows, S)),
        compiler_params=pltpu.CompilerParams(dimension_semantics=("arbitrary",)),
    )(x2d)


def _conv_matmul(wmat, patches, bias, out_dtype):
    """(Cout, K) @ (K, M) + bias, lane-dense (Cout, M) output, single grid step."""
    Cout, K = wmat.shape
    Kp, M = patches.shape
    assert K == Kp
    return pl.pallas_call(
        _conv_matmul_kernel,
        out_shape=jax.ShapeDtypeStruct((Cout, M), out_dtype),
        grid=(1,),
        in_specs=[_full_spec((Cout, K)), _full_spec((K, M)), _full_spec((Cout, 1))],
        out_specs=_full_spec((Cout, M)),
        compiler_params=pltpu.CompilerParams(dimension_semantics=("parallel",)),
    )(wmat, patches, bias)


def _fused_conv_bypass(w2, p2, wb, pb, bias, out_dtype):
    """conv2 + bypass conv + combined bias + ReLU, all in one kernel."""
    Cout, K2 = w2.shape
    _, M = p2.shape
    _, Kb = wb.shape
    return pl.pallas_call(
        _fused_conv_bypass_kernel,
        out_shape=jax.ShapeDtypeStruct((Cout, M), out_dtype),
        grid=(1,),
        in_specs=[
            _full_spec((Cout, K2)), _full_spec((K2, M)),
            _full_spec((Cout, Kb)), _full_spec((Kb, M)),
            _full_spec((Cout, 1)),
        ],
        out_specs=_full_spec((Cout, M)),
        compiler_params=pltpu.CompilerParams(dimension_semantics=("parallel",)),
    )(w2, p2, wb, pb, bias)


# ---------------------------------------------------------------------------
# Glue: patch / weight matrix construction (layout plumbing only, no compute)
# ---------------------------------------------------------------------------
def _round_up(n, m):
    return ((n + m - 1) // m) * m


def _extract_patches_T(x_cn, k, stride, padding, k_pad, dtype=jnp.bfloat16):
    """x_cn: (C, N, D, H, W) -> patches^T (k_pad, N*Do*Ho*Wo), K order (kd, kh, kw, c).

    Tap slices are produced directly in the (K, M) layout the matmul kernels
    consume; no (27, N, C, ...) intermediate or 6-D transpose is materialized.
    """
    x_cn = x_cn.astype(dtype)
    C, N, D, H, W = x_cn.shape
    if padding > 0:
        p = padding
        x_cn = jnp.pad(x_cn, ((0, 0), (0, 0), (p, p), (p, p), (p, p)))
    Do = (D + 2 * padding - k) // stride + 1
    Ho = (H + 2 * padding - k) // stride + 1
    Wo = (W + 2 * padding - k) // stride + 1
    M = N * Do * Ho * Wo
    taps = []
    for kd in range(k):
        for kh in range(k):
            for kw in range(k):
                t = x_cn[:, :,
                         kd:kd + stride * Do:stride,
                         kh:kh + stride * Ho:stride,
                         kw:kw + stride * Wo:stride]
                taps.append(t.reshape(C, M))
    K = C * k * k * k
    if k_pad > K:
        taps.append(jnp.zeros((k_pad - K, M), dtype))
    return jnp.concatenate(taps, axis=0), (Do, Ho, Wo)


def _weight_matrix(w, k_pad, dtype=jnp.bfloat16):
    """(Cout, Cin, k, k, k) PyTorch layout -> (Cout, k_pad), K order (kd, kh, kw, cin)."""
    Cout = w.shape[0]
    wm = jnp.transpose(w, (0, 2, 3, 4, 1)).reshape(Cout, -1)
    K = wm.shape[1]
    if k_pad > K:
        wm = jnp.pad(wm, ((0, 0), (0, k_pad - K)))
    return wm.astype(dtype)


# ---------------------------------------------------------------------------
# ResnetEncoder forward
# ---------------------------------------------------------------------------
@jax.jit
def resnet_encoder_forward(x_in, params):
    N, C, D, H, W = x_in.shape
    # One layout move to (C, N, D, H, W); everything downstream is built directly
    # in the (K, M) / (Cout, M) layouts the Pallas matmuls want.
    x_cn = jnp.transpose(x_in, (1, 0, 2, 3, 4))

    # ---- pass1: InstanceNorm3d(C) + ReLU -> Conv3d(C, 32, k=3, s=2, p=1) ----
    h1 = instance_norm_relu_rows(x_cn.reshape(C * N, D * H * W), jnp.bfloat16)
    h1 = h1.reshape(C, N, D, H, W)
    K1p = _round_up(C * 27, 128)
    p1, (D1, H1, W1) = _extract_patches_T(h1, 3, 2, 1, K1p)
    w1 = _weight_matrix(params["w1"], K1p)
    b1 = params["b1"].reshape(-1, 1).astype(jnp.float32)
    y1 = _conv_matmul(w1, p1, b1, jnp.float32)          # (32, N*D1*H1*W1), lane-dense

    # ---- pass2: InstanceNorm3d(32) + ReLU -> Conv3d(32, 32, k=3, s=2, p=1) ----
    C1 = y1.shape[0]
    h2 = instance_norm_relu_rows(y1.reshape(C1 * N, D1 * H1 * W1), jnp.bfloat16)
    h2 = h2.reshape(C1, N, D1, H1, W1)
    K2p = _round_up(C1 * 27, 128)
    p2, (D2, H2, W2) = _extract_patches_T(h2, 3, 2, 1, K2p)
    w2 = _weight_matrix(params["w2"], K2p)

    # ---- bypass: Conv3d(C, 32, k=3, s=4, p=0), fused with conv2 + add + ReLU ----
    Kbp = _round_up(C * 27, 128)
    pb, (Db, Hb, Wb) = _extract_patches_T(x_cn, 3, 4, 0, Kbp)
    wb = _weight_matrix(params["wb"], Kbp)
    bsum = (params["b2"] + params["bb"]).reshape(-1, 1).astype(jnp.float32)

    out_T = _fused_conv_bypass(w2, p2, wb, pb, bsum, x_in.dtype)  # (32, N*D2*H2*W2)

    out = jnp.transpose(out_T.reshape(32, N, D2, H2, W2), (1, 0, 2, 3, 4))
    return out  # (N, 32, 4, 4, 4) for D=H=W=16 input


# ---------------------------------------------------------------------------
if __name__ == "__main__":
    key = jax.random.PRNGKey(0)
    k1, k2, k3, k4, k5, k6, kx = jax.random.split(key, 7)

    C = 4
    params = {
        "w1": jax.random.normal(k1, (32, C, 3, 3, 3), jnp.float32) * 0.1,
        "b1": jax.random.normal(k2, (32,), jnp.float32) * 0.1,
        "w2": jax.random.normal(k3, (32, 32, 3, 3, 3), jnp.float32) * 0.05,
        "b2": jax.random.normal(k4, (32,), jnp.float32) * 0.1,
        "wb": jax.random.normal(k5, (32, C, 3, 3, 3), jnp.float32) * 0.1,
        "bb": jax.random.normal(k6, (32,), jnp.float32) * 0.1,
    }

    x = jax.random.normal(kx, (2, C, 16, 16, 16), jnp.float32)  # NCDHW

    out = resnet_encoder_forward(x, params)
    out = jax.block_until_ready(out)
    assert out.shape == (2, 32, 4, 4, 4), out.shape
    assert bool(jnp.all(out >= 0.0))  # final ReLU
    print("KERNEL_OK")
</pallas_src>

<mosaic_0001>
module attributes {stable_mosaic.version = 11 : i64} {
  func.func @_instnorm_relu_kernel(%arg0: i32, %arg1: memref<8x4096xf32, #tpu.memory_space<vmem>>, %arg2: memref<8x4096xbf16, #tpu.memory_space<vmem>>) attributes {dimension_semantics = [#tpu.dimension_semantics<arbitrary>], iteration_bounds = array<i64: 1>, scalar_prefetch = 0 : i64, scratch_operands = 0 : i64, tpu.core_type = #tpu.core_type<tc>, window_params = [{pipeline_mode = #tpu.pipeline_mode<synchronous>, transform_indices = @transform_0, window_bounds = array<i64: 8, 4096>}, {pipeline_mode = #tpu.pipeline_mode<synchronous>, transform_indices = @transform_1, window_bounds = array<i64: 8, 4096>}]} {
    %c0 = arith.constant 0 : index
    %c0_0 = arith.constant 0 : index
    %0 = vector.load %arg1[%c0, %c0_0] : memref<8x4096xf32, #tpu.memory_space<vmem>>, vector<8x4096xf32>
    %cst = arith.constant dense<0.000000e+00> : vector<8xf32>
    %1 = vector.multi_reduction <add>, %0, %cst [1] : vector<8x4096xf32> to vector<8xf32>
    %2 = vector.shape_cast %1 : vector<8xf32> to vector<8x1xf32>
    %cst_1 = arith.constant 4.096000e+03 : f32
    %3 = vector.broadcast %cst_1 : f32 to vector<8x1xf32>
    %4 = arith.divf %2, %3 : vector<8x1xf32>
    %5 = vector.broadcast %4 : vector<8x1xf32> to vector<8x4096xf32>
    %6 = arith.subf %0, %5 : vector<8x4096xf32>
    %7 = arith.mulf %6, %6 : vector<8x4096xf32>
    %cst_2 = arith.constant dense<0.000000e+00> : vector<8xf32>
    %8 = vector.multi_reduction <add>, %7, %cst_2 [1] : vector<8x4096xf32> to vector<8xf32>
    %9 = vector.shape_cast %8 : vector<8xf32> to vector<8x1xf32>
    %cst_3 = arith.constant 4.096000e+03 : f32
    %10 = vector.broadcast %cst_3 : f32 to vector<8x1xf32>
    %11 = arith.divf %9, %10 : vector<8x1xf32>
    %12 = vector.broadcast %4 : vector<8x1xf32> to vector<8x4096xf32>
    %13 = arith.subf %0, %12 : vector<8x4096xf32>
    %cst_4 = arith.constant 9.99999974E-6 : f32
    %14 = vector.broadcast %cst_4 : f32 to vector<8x1xf32>
    %15 = arith.addf %11, %14 : vector<8x1xf32>
    %16 = math.rsqrt %15 : vector<8x1xf32>
    %17 = vector.broadcast %16 : vector<8x1xf32> to vector<8x4096xf32>
    %18 = arith.mulf %13, %17 : vector<8x4096xf32>
    %cst_5 = arith.constant 0.000000e+00 : f32
    %19 = vector.broadcast %cst_5 : f32 to vector<8x4096xf32>
    %20 = arith.maximumf %18, %19 : vector<8x4096xf32>
    %21 = arith.truncf %20 : vector<8x4096xf32> to vector<8x4096xbf16>
    %c0_6 = arith.constant 0 : index
    %c0_7 = arith.constant 0 : index
    %22 = vector.load %arg2[%c0_6, %c0_7] : memref<8x4096xbf16, #tpu.memory_space<vmem>>, vector<8x4096xbf16>
    tpu.vector_store %arg2[%c0_6, %c0_7], %21 {strides = array<i32>} : memref<8x4096xbf16, #tpu.memory_space<vmem>>, vector<8x4096xbf16>,
    return
  }
  func.func @transform_0(%arg0: i32) -> (i32, i32) {
    %c0_i32 = arith.constant 0 : i32
    %c0_i32_0 = arith.constant 0 : i32
    %c0_i32_1 = arith.constant 0 : i32
    return %c0_i32, %c0_i32_0 : i32, i32
  }
  func.func @transform_1(%arg0: i32) -> (i32, i32) {
    %c0_i32 = arith.constant 0 : i32
    %c0_i32_0 = arith.constant 0 : i32
    %c0_i32_1 = arith.constant 0 : i32
    return %c0_i32, %c0_i32_0 : i32, i32
  }
}

module attributes {stable_mosaic.version = 11 : i64} {
  func.func @_conv_matmul_kernel(%arg0: i32, %arg1: memref<32x128xbf16, #tpu.memory_space<vmem>>, %arg2: memref<128x1024xbf16, #tpu.memory_space<vmem>>, %arg3: memref<32x1xf32, #tpu.memory_space<vmem>>, %arg4: memref<32x1024xf32, #tpu.memory_space<vmem>>) attributes {dimension_semantics = [#tpu.dimension_semantics<parallel>], iteration_bounds = array<i64: 1>, scalar_prefetch = 0 : i64, scratch_operands = 0 : i64, tpu.core_type = #tpu.core_type<tc>, window_params = [{pipeline_mode = #tpu.pipeline_mode<synchronous>, transform_indices = @transform_0, window_bounds = array<i64: 32, 128>}, {pipeline_mode = #tpu.pipeline_mode<synchronous>, transform_indices = @transform_1, window_bounds = array<i64: 128, 1024>}, {pipeline_mode = #tpu.pipeline_mode<synchronous>, transform_indices = @transform_2, window_bounds = array<i64: 32, 1>}, {pipeline_mode = #tpu.pipeline_mode<synchronous>, transform_indices = @transform_3, window_bounds = array<i64: 32, 1024>}]} {
    %c0 = arith.constant 0 : index
    %c0_0 = arith.constant 0 : index
    %0 = vector.load %arg1[%c0, %c0_0] : memref<32x128xbf16, #tpu.memory_space<vmem>>, vector<32x128xbf16>
    %c0_1 = arith.constant 0 : index
    %c0_2 = arith.constant 0 : index
    %1 = vector.load %arg2[%c0_1, %c0_2] : memref<128x1024xbf16, #tpu.memory_space<vmem>>, vector<128x1024xbf16>
    %cst = arith.constant dense<0.000000e+00> : vector<32x1024xf32>
    %2 = tpu.matmul %0, %1, %cst {dimension_numbers = #tpu.dot_dimension_numbers<[1], [0], [0], [1], [0, 0, 1, 1], [], []>} : vector<32x128xbf16>, vector<128x1024xbf16>, vector<32x1024xf32> -> vector<32x1024xf32>
    %c0_3 = arith.constant 0 : index
    %c0_4 = arith.constant 0 : index
    %3 = vector.load %arg3[%c0_3, %c0_4] : memref<32x1xf32, #tpu.memory_space<vmem>>, vector<32x1xf32>
    %4 = vector.broadcast %3 : vector<32x1xf32> to vector<32x1024xf32>
    %5 = arith.addf %2, %4 : vector<32x1024xf32>
    %c0_5 = arith.constant 0 : index
    %c0_6 = arith.constant 0 : index
    %6 = vector.load %arg4[%c0_5, %c0_6] : memref<32x1024xf32, #tpu.memory_space<vmem>>, vector<32x1024xf32>
    tpu.vector_store %arg4[%c0_5, %c0_6], %5 {strides = array<i32>} : memref<32x1024xf32, #tpu.memory_space<vmem>>, vector<32x1024xf32>,
    return
  }
  func.func @transform_0(%arg0: i32) -> (i32, i32) {
    %c0_i32 = arith.constant 0 : i32
    %c0_i32_0 = arith.constant 0 : i32
    %c0_i32_1 = arith.constant 0 : i32
    return %c0_i32, %c0_i32_0 : i32, i32
  }
  func.func @transform_1(%arg0: i32) -> (i32, i32) {
    %c0_i32 = arith.constant 0 : i32
    %c0_i32_0 = arith.constant 0 : i32
    %c0_i32_1 = arith.constant 0 : i32
    return %c0_i32, %c0_i32_0 : i32, i32
  }
  func.func @transform_2(%arg0: i32) -> (i32, i32) {
    %c0_i32 = arith.constant 0 : i32
    %c0_i32_0 = arith.constant 0 : i32
    %c0_i32_1 = arith.constant 0 : i32
    return %c0_i32, %c0_i32_0 : i32, i32
  }
  func.func @transform_3(%arg0: i32) -> (i32, i32) {
    %c0_i32 = arith.constant 0 : i32
    %c0_i32_0 = arith.constant 0 : i32
    %c0_i32_1 = arith.constant 0 : i32
    return %c0_i32, %c0_i32_0 : i32, i32
  }
}

module attributes {stable_mosaic.version = 11 : i64} {
  func.func @_instnorm_relu_kernel(%arg0: i32, %arg1: memref<64x512xf32, #tpu.memory_space<vmem>>, %arg2: memref<64x512xbf16, #tpu.memory_space<vmem>>) attributes {dimension_semantics = [#tpu.dimension_semantics<arbitrary>], iteration_bounds = array<i64: 1>, scalar_prefetch = 0 : i64, scratch_operands = 0 : i64, tpu.core_type = #tpu.core_type<tc>, window_params = [{pipeline_mode = #tpu.pipeline_mode<synchronous>, transform_indices = @transform_0, window_bounds = array<i64: 64, 512>}, {pipeline_mode = #tpu.pipeline_mode<synchronous>, transform_indices = @transform_1, window_bounds = array<i64: 64, 512>}]} {
    %c0 = arith.constant 0 : index
    %c0_0 = arith.constant 0 : index
    %0 = vector.load %arg1[%c0, %c0_0] : memref<64x512xf32, #tpu.memory_space<vmem>>, vector<64x512xf32>
    %cst = arith.constant dense<0.000000e+00> : vector<64xf32>
    %1 = vector.multi_reduction <add>, %0, %cst [1] : vector<64x512xf32> to vector<64xf32>
    %2 = vector.shape_cast %1 : vector<64xf32> to vector<64x1xf32>
    %cst_1 = arith.constant 5.120000e+02 : f32
    %3 = vector.broadcast %cst_1 : f32 to vector<64x1xf32>
    %4 = arith.divf %2, %3 : vector<64x1xf32>
    %5 = vector.broadcast %4 : vector<64x1xf32> to vector<64x512xf32>
    %6 = arith.subf %0, %5 : vector<64x512xf32>
    %7 = arith.mulf %6, %6 : vector<64x512xf32>
    %cst_2 = arith.constant dense<0.000000e+00> : vector<64xf32>
    %8 = vector.multi_reduction <add>, %7, %cst_2 [1] : vector<64x512xf32> to vector<64xf32>
    %9 = vector.shape_cast %8 : vector<64xf32> to vector<64x1xf32>
    %cst_3 = arith.constant 5.120000e+02 : f32
    %10 = vector.broadcast %cst_3 : f32 to vector<64x1xf32>
    %11 = arith.divf %9, %10 : vector<64x1xf32>
    %12 = vector.broadcast %4 : vector<64x1xf32> to vector<64x512xf32>
    %13 = arith.subf %0, %12 : vector<64x512xf32>
    %cst_4 = arith.constant 9.99999974E-6 : f32
    %14 = vector.broadcast %cst_4 : f32 to vector<64x1xf32>
    %15 = arith.addf %11, %14 : vector<64x1xf32>
    %16 = math.rsqrt %15 : vector<64x1xf32>
    %17 = vector.broadcast %16 : vector<64x1xf32> to vector<64x512xf32>
    %18 = arith.mulf %13, %17 : vector<64x512xf32>
    %cst_5 = arith.constant 0.000000e+00 : f32
    %19 = vector.broadcast %cst_5 : f32 to vector<64x512xf32>
    %20 = arith.maximumf %18, %19 : vector<64x512xf32>
    %21 = arith.truncf %20 : vector<64x512xf32> to vector<64x512xbf16>
    %c0_6 = arith.constant 0 : index
    %c0_7 = arith.constant 0 : index
    %22 = vector.load %arg2[%c0_6, %c0_7] : memref<64x512xbf16, #tpu.memory_space<vmem>>, vector<64x512xbf16>
    tpu.vector_store %arg2[%c0_6, %c0_7], %21 {strides = array<i32>} : memref<64x512xbf16, #tpu.memory_space<vmem>>, vector<64x512xbf16>,
    return
  }
  func.func @transform_0(%arg0: i32) -> (i32, i32) {
    %c0_i32 = arith.constant 0 : i32
    %c0_i32_0 = arith.constant 0 : i32
    %c0_i32_1 = arith.constant 0 : i32
    return %c0_i32, %c0_i32_0 : i32, i32
  }
  func.func @transform_1(%arg0: i32) -> (i32, i32) {
    %c0_i32 = arith.constant 0 : i32
    %c0_i32_0 = arith.constant 0 : i32
    %c0_i32_1 = arith.constant 0 : i32
    return %c0_i32, %c0_i32_0 : i32, i32
  }
}

module attributes {stable_mosaic.version = 11 : i64} {
  func.func @_fused_conv_bypass_kernel(%arg0: i32, %arg1: memref<32x896xbf16, #tpu.memory_space<vmem>>, %arg2: memref<896x128xbf16, #tpu.memory_space<vmem>>, %arg3: memref<32x128xbf16, #tpu.memory_space<vmem>>, %arg4: memref<128x128xbf16, #tpu.memory_space<vmem>>, %arg5: memref<32x1xf32, #tpu.memory_space<vmem>>, %arg6: memref<32x128xf32, #tpu.memory_space<vmem>>) attributes {dimension_semantics = [#tpu.dimension_semantics<parallel>], iteration_bounds = array<i64: 1>, scalar_prefetch = 0 : i64, scratch_operands = 0 : i64, tpu.core_type = #tpu.core_type<tc>, window_params = [{pipeline_mode = #tpu.pipeline_mode<synchronous>, transform_indices = @transform_0, window_bounds = array<i64: 32, 896>}, {pipeline_mode = #tpu.pipeline_mode<synchronous>, transform_indices = @transform_1, window_bounds = array<i64: 896, 128>}, {pipeline_mode = #tpu.pipeline_mode<synchronous>, transform_indices = @transform_2, window_bounds = array<i64: 32, 128>}, {pipeline_mode = #tpu.pipeline_mode<synchronous>, transform_indices = @transform_3, window_bounds = array<i64: 128, 128>}, {pipeline_mode = #tpu.pipeline_mode<synchronous>, transform_indices = @transform_4, window_bounds = array<i64: 32, 1>}, {pipeline_mode = #tpu.pipeline_mode<synchronous>, transform_indices = @transform_5, window_bounds = array<i64: 32, 128>}]} {
    %c0 = arith.constant 0 : index
    %c0_0 = arith.constant 0 : index
    %0 = vector.load %arg1[%c0, %c0_0] : memref<32x896xbf16, #tpu.memory_space<vmem>>, vector<32x896xbf16>
    %c0_1 = arith.constant 0 : index
    %c0_2 = arith.constant 0 : index
    %1 = vector.load %arg2[%c0_1, %c0_2] : memref<896x128xbf16, #tpu.memory_space<vmem>>, vector<896x128xbf16>
    %cst = arith.constant dense<0.000000e+00> : vector<32x128xf32>
    %2 = tpu.matmul %0, %1, %cst {dimension_numbers = #tpu.dot_dimension_numbers<[1], [0], [0], [1], [0, 0, 1, 1], [], []>} : vector<32x896xbf16>, vector<896x128xbf16>, vector<32x128xf32> -> vector<32x128xf32>
    %c0_3 = arith.constant 0 : index
    %c0_4 = arith.constant 0 : index
    %3 = vector.load %arg3[%c0_3, %c0_4] : memref<32x128xbf16, #tpu.memory_space<vmem>>, vector<32x128xbf16>
    %c0_5 = arith.constant 0 : index
    %c0_6 = arith.constant 0 : index
    %4 = vector.load %arg4[%c0_5, %c0_6] : memref<128x128xbf16, #tpu.memory_space<vmem>>, vector<128x128xbf16>
    %cst_7 = arith.constant dense<0.000000e+00> : vector<32x128xf32>
    %5 = tpu.matmul %3, %4, %cst_7 {dimension_numbers = #tpu.dot_dimension_numbers<[1], [0], [0], [1], [0, 0, 1, 1], [], []>} : vector<32x128xbf16>, vector<128x128xbf16>, vector<32x128xf32> -> vector<32x128xf32>
    %6 = arith.addf %2, %5 : vector<32x128xf32>
    %c0_8 = arith.constant 0 : index
    %c0_9 = arith.constant 0 : index
    %7 = vector.load %arg5[%c0_8, %c0_9] : memref<32x1xf32, #tpu.memory_space<vmem>>, vector<32x1xf32>
    %8 = vector.broadcast %7 : vector<32x1xf32> to vector<32x128xf32>
    %9 = arith.addf %6, %8 : vector<32x128xf32>
    %cst_10 = arith.constant 0.000000e+00 : f32
    %10 = vector.broadcast %cst_10 : f32 to vector<32x128xf32>
    %11 = arith.maximumf %9, %10 : vector<32x128xf32>
    %c0_11 = arith.constant 0 : index
    %c0_12 = arith.constant 0 : index
    %12 = vector.load %arg6[%c0_11, %c0_12] : memref<32x128xf32, #tpu.memory_space<vmem>>, vector<32x128xf32>
    tpu.vector_store %arg6[%c0_11, %c0_12], %11 {strides = array<i32>} : memref<32x128xf32, #tpu.memory_space<vmem>>, vector<32x128xf32>,
    return
  }
  func.func @transform_0(%arg0: i32) -> (i32, i32) {
    %c0_i32 = arith.constant 0 : i32
    %c0_i32_0 = arith.constant 0 : i32
    %c0_i32_1 = arith.constant 0 : i32
    return %c0_i32, %c0_i32_0 : i32, i32
  }
  func.func @transform_1(%arg0: i32) -> (i32, i32) {
    %c0_i32 = arith.constant 0 : i32
    %c0_i32_0 = arith.constant 0 : i32
    %c0_i32_1 = arith.constant 0 : i32
    return %c0_i32, %c0_i32_0 : i32, i32
  }
  func.func @transform_2(%arg0: i32) -> (i32, i32) {
    %c0_i32 = arith.constant 0 : i32
    %c0_i32_0 = arith.constant 0 : i32
    %c0_i32_1 = arith.constant 0 : i32
    return %c0_i32, %c0_i32_0 : i32, i32
  }
  func.func @transform_3(%arg0: i32) -> (i32, i32) {
    %c0_i32 = arith.constant 0 : i32
    %c0_i32_0 = arith.constant 0 : i32
    %c0_i32_1 = arith.constant 0 : i32
    return %c0_i32, %c0_i32_0 : i32, i32
  }
  func.func @transform_4(%arg0: i32) -> (i32, i32) {
    %c0_i32 = arith.constant 0 : i32
    %c0_i32_0 = arith.constant 0 : i32
    %c0_i32_1 = arith.constant 0 : i32
    return %c0_i32, %c0_i32_0 : i32, i32
  }
  func.func @transform_5(%arg0: i32) -> (i32, i32) {
    %c0_i32 = arith.constant 0 : i32
    %c0_i32_0 = arith.constant 0 : i32
    %c0_i32_1 = arith.constant 0 : i32
    return %c0_i32, %c0_i32_0 : i32, i32
  }
}

</mosaic_0001>

<bundles_post_ra>
// kernel: resnet_encoder_forward.4
= control target key start
LH: loop header
LB: loop body
LE: loop exit
PB: predicated region body
PF: predicated region fallthrough
CT: control target
= control target key end

     0   :  { %v295_v63 = vmov 4096.0   ;;  %s810_s0 = inlined_call_operand.vmem [shape: f32[8,4096], index: 0, kind: input, shape index: {}]   ;;  %s811_s1 = inlined_call_operand.vmem [shape: bf16[8,4096], index: 1, kind: output, shape index: {}]  }
   0x1   :  { %v309_v0 = vld [vmem:[%s810_s0] sm:$0xff]  ;;  %v314_v1 = vld [vmem:[%s810_s0 + $0x8] sm:$0xff]  ;;  %v319_v2 = vld [vmem:[%s810_s0 + $0x10] sm:$0xff]  ;;  %291 = vrcp.f32 %v295_v63 }
   0x2   :  { %v40_v3 = vadd.f32 %v314_v1, %v309_v0  ;;  %v326_v4 = vld [vmem:[%s810_s0 + $0x18] sm:$0xff]  ;;  %v332_v6 = vld [vmem:[%s810_s0 + $0x20] sm:$0xff]  ;;  %v338_v8 = vld [vmem:[%s810_s0 + $0x28] sm:$0xff] }
   0x3   :  { %v344_v10 = vld [vmem:[%s810_s0 + $0x30] sm:$0xff]  ;;  %v350_v12 = vld [vmem:[%s810_s0 + $0x38] sm:$0xff]  ;;  %v356_v14 = vld [vmem:[%s810_s0 + $0x40] sm:$0xff] }
   0x4   :  { %v41_v5 = vadd.f32 %v40_v3, %v319_v2  ;;  %v362_v16 = vld [vmem:[%s810_s0 + $0x48] sm:$0xff]  ;;  %v368_v18 = vld [vmem:[%s810_s0 + $0x50] sm:$0xff]  ;;  %v374_v20 = vld [vmem:[%s810_s0 + $0x58] sm:$0xff] }
   0x5   :  { %v380_v22 = vld [vmem:[%s810_s0 + $0x60] sm:$0xff]  ;;  %v386_v24 = vld [vmem:[%s810_s0 + $0x68] sm:$0xff]  ;;  %v392_v26 = vld [vmem:[%s810_s0 + $0x70] sm:$0xff] }
   0x6   :  { %v42_v7 = vadd.f32 %v41_v5, %v326_v4  ;;  %v398_v28 = vld [vmem:[%s810_s0 + $0x78] sm:$0xff]  ;;  %v404_v30 = vld [vmem:[%s810_s0 + $0x80] sm:$0xff]  ;;  %v410_v32 = vld [vmem:[%s810_s0 + $0x88] sm:$0xff] }
   0x7   :  { %v416_v34 = vld [vmem:[%s810_s0 + $0x90] sm:$0xff]  ;;  %v422_v36 = vld [vmem:[%s810_s0 + $0x98] sm:$0xff]  ;;  %v428_v38 = vld [vmem:[%s810_s0 + $0xa0] sm:$0xff]  ;;  %v292_v3 = vpop.eup %291 }
   0x8   :  { %v43_v9 = vadd.f32 %v42_v7, %v332_v6  ;;  %v434_v40 = vld [vmem:[%s810_s0 + $0xa8] sm:$0xff]  ;;  %v440_v42 = vld [vmem:[%s810_s0 + $0xb0] sm:$0xff]  ;;  %v446_v44 = vld [vmem:[%s810_s0 + $0xb8] sm:$0xff]  ;;  %v74_v5 = vmul.f32 4096.0, %v292_v3  ;;  %vm78_vm0 = vweird.f32 %v292_v3 }
   0x9   :  { %v452_v46 = vld [vmem:[%s810_s0 + $0xc0] sm:$0xff]  ;;  %v458_v48 = vld [vmem:[%s810_s0 + $0xc8] sm:$0xff]  ;;  %v464_v50 = vld [vmem:[%s810_s0 + $0xd0] sm:$0xff] }
   0xa   :  { %v44_v11 = vadd.f32 %v43_v9, %v338_v8  ;;  %v470_v52 = vld [vmem:[%s810_s0 + $0xd8] sm:$0xff]  ;;  %v476_v54 = vld [vmem:[%s810_s0 + $0xe0] sm:$0xff]  ;;  %v482_v56 = vld [vmem:[%s810_s0 + $0xe8] sm:$0xff]  ;;  %v75_v7 = vsub.f32 1.0, %v74_v5 }
   0xb   :  { %v488_v58 = vld [vmem:[%s810_s0 + $0xf0] sm:$0xff]  ;;  %v494_v60 = vld [vmem:[%s810_s0 + $0xf8] sm:$0xff] }
   0xc   :  { %v45_v13 = vadd.f32 %v44_v11, %v344_v10  ;;  %v76_v9 = vmul.f32 %v292_v3, %v75_v7 }
   0xe   :  { %v46_v15 = vadd.f32 %v45_v13, %v350_v12  ;;  %v77_v11 = vadd.f32 %v292_v3, %v76_v9 }
  0x10   :  { %v47_v17 = vadd.f32 %v46_v15, %v356_v14  ;;  %v498_v15 = vsel %vm78_vm0, %v292_v3, %v77_v11 }
  0x12   :  { %v48_v19 = vadd.f32 %v47_v17, %v362_v16 }
  0x14   :  { %v49_v21 = vadd.f32 %v48_v19, %v368_v18 }
  0x16   :  { %v50_v23 = vadd.f32 %v49_v21, %v374_v20 }
  0x18   :  { %v51_v25 = vadd.f32 %v50_v23, %v380_v22 }
  0x1a   :  { %v52_v27 = vadd.f32 %v51_v25, %v386_v24 }
  0x1c   :  { %v53_v29 = vadd.f32 %v52_v27, %v392_v26 }
  0x1e   :  { %v54_v31 = vadd.f32 %v53_v29, %v398_v28 }
  0x20   :  { %v55_v33 = vadd.f32 %v54_v31, %v404_v30 }
  0x22   :  { %v56_v35 = vadd.f32 %v55_v33, %v410_v32 }
  0x24   :  { %v57_v37 = vadd.f32 %v56_v35, %v416_v34 }
  0x26   :  { %v58_v39 = vadd.f32 %v57_v37, %v422_v36 }
  0x28   :  { %v59_v41 = vadd.f32 %v58_v39, %v428_v38 }
  0x2a   :  { %v60_v43 = vadd.f32 %v59_v41, %v434_v40 }
  0x2c   :  { %v61_v45 = vadd.f32 %v60_v43, %v440_v42 }
  0x2e   :  { %v62_v47 = vadd.f32 %v61_v45, %v446_v44 }
  0x30   :  { %v63_v49 = vadd.f32 %v62_v47, %v452_v46 }
  0x32   :  { %v64_v51 = vadd.f32 %v63_v49, %v458_v48 }
  0x34   :  { %v65_v53 = vadd.f32 %v64_v51, %v464_v50 }
  0x36   :  { %v66_v55 = vadd.f32 %v65_v53, %v470_v52 }
  0x38   :  { %v67_v57 = vadd.f32 %v66_v55, %v476_v54 }
  0x3a   :  { %v68_v59 = vadd.f32 %v67_v57, %v482_v56 }
  0x3c   :  { %v69_v61 = vadd.f32 %v68_v59, %v488_v58 }
  0x3e   :  { %v70_v62 = vadd.f32 %v69_v61, %v494_v60 }
  0x40   :  { %71 = vadd.xlane.f32.xlu0 %v70_v62 }
  0xb3   :  { %v72_v13 = vpop.xlane.xlu0 %71 }
  0xb4   :  { %v501_v17 = vmul.f32 %v498_v15, %v72_v13 }
  0xb6   :  { %v505_v19 = vsub.f32 %v309_v0, %v501_v17  ;;  %v509_v21 = vsub.f32 %v314_v1, %v501_v17  ;;  %v513_v23 = vsub.f32 %v319_v2, %v501_v17  ;;  %v521_v29 = vsub.f32 %v326_v4, %v501_v17 }
  0xb7   :  { %v525_v0 = vsub.f32 %v332_v6, %v501_v17  ;;  %v531_v2 = vsub.f32 %v338_v8, %v501_v17  ;;  %v537_v4 = vsub.f32 %v344_v10, %v501_v17  ;;  %v543_v39 = vsub.f32 %v350_v12, %v501_v17 }
  0xb8   :  { %v113_v25 = vmul.f32 %v505_v19, %v505_v19  ;;  %v114_v27 = vmul.f32 %v509_v21, %v509_v21  ;;  %v115_v1 = vmul.f32 %v513_v23, %v513_v23  ;;  %v116_v33 = vmul.f32 %v521_v29, %v521_v29 }
  0xb9   :  { %v117_v6 = vmul.f32 %v525_v0, %v525_v0  ;;  %v118_v8 = vmul.f32 %v531_v2, %v531_v2  ;;  %v549_v43 = vsub.f32 %v356_v14, %v501_v17  ;;  %v119_v10 = vmul.f32 %v537_v4, %v537_v4 }
  0xba   :  { %v145_v31 = vadd.f32 %v114_v27, %v113_v25  ;;  %v555_v47 = vsub.f32 %v362_v16, %v501_v17  ;;  %v120_v12 = vmul.f32 %v543_v39, %v543_v39  ;;  %v561_v51 = vsub.f32 %v368_v18, %v501_v17 }
  0xbb   :  { %v121_v14 = vmul.f32 %v549_v43, %v549_v43  ;;  %v567_v55 = vsub.f32 %v374_v20, %v501_v17  ;;  %v573_v59 = vsub.f32 %v380_v22, %v501_v17  ;;  %v579_v62 = vsub.f32 %v386_v24, %v501_v17 }
  0xbc   :  { %v146_v35 = vadd.f32 %v145_v31, %v115_v1  ;;  %v122_v16 = vmul.f32 %v555_v47, %v555_v47  ;;  %v123_v18 = vmul.f32 %v561_v51, %v561_v51  ;;  %v585_v3 = vsub.f32 %v392_v26, %v501_v17 }
  0xbd   :  { %v124_v20 = vmul.f32 %v567_v55, %v567_v55  ;;  %v125_v22 = vmul.f32 %v573_v59, %v573_v59  ;;  %v591_v7 = vsub.f32 %v398_v28, %v501_v17  ;;  %v126_v24 = vmul.f32 %v579_v62, %v579_v62 }
  0xbe   :  { %v147_v37 = vadd.f32 %v146_v35, %v116_v33  ;;  %v597_v11 = vsub.f32 %v404_v30, %v501_v17  ;;  %v127_v26 = vmul.f32 %v585_v3, %v585_v3  ;;  %v603_v25 = vsub.f32 %v410_v32, %v501_v17 }
  0xbf   :  { %v128_v28 = vmul.f32 %v591_v7, %v591_v7  ;;  %v609_v1 = vsub.f32 %v416_v34, %v501_v17  ;;  %v615_v33 = vsub.f32 %v422_v36, %v501_v17 }
  0xc0   :  { %v148_v41 = vadd.f32 %v147_v37, %v117_v6  ;;  %v129_v30 = vmul.f32 %v597_v11, %v597_v11  ;;  %v130_v32 = vmul.f32 %v603_v25, %v603_v25  ;;  %v621_v6 = vsub.f32 %v428_v38, %v501_v17 }
  0xc1   :  { %v131_v34 = vmul.f32 %v609_v1, %v609_v1  ;;  %v132_v36 = vmul.f32 %v615_v33, %v615_v33 }
  0xc2   :  { %v149_v45 = vadd.f32 %v148_v41, %v118_v8  ;;  %v627_v8 = vsub.f32 %v434_v40, %v501_v17  ;;  %v133_v38 = vmul.f32 %v621_v6, %v621_v6 }
  0xc4   :  { %v150_v49 = vadd.f32 %v149_v45, %v119_v10  ;;  %v633_v10 = vsub.f32 %v440_v42, %v501_v17  ;;  %v134_v40 = vmul.f32 %v627_v8, %v627_v8 }
  0xc6   :  { %v151_v53 = vadd.f32 %v150_v49, %v120_v12  ;;  %v639_v12 = vsub.f32 %v446_v44, %v501_v17  ;;  %v135_v42 = vmul.f32 %v633_v10, %v633_v10 }
  0xc8   :  { %v152_v57 = vadd.f32 %v151_v53, %v121_v14  ;;  %v645_v14 = vsub.f32 %v452_v46, %v501_v17  ;;  %v136_v44 = vmul.f32 %v639_v12, %v639_v12 }
  0xca   :  { %v153_v61 = vadd.f32 %v152_v57, %v122_v16  ;;  %v651_v16 = vsub.f32 %v458_v48, %v501_v17  ;;  %v137_v46 = vmul.f32 %v645_v14, %v645_v14 }
  0xcc   :  { %v154_v63 = vadd.f32 %v153_v61, %v123_v18  ;;  %v657_v18 = vsub.f32 %v464_v50, %v501_v17  ;;  %v138_v48 = vmul.f32 %v651_v16, %v651_v16 }
  0xce   :  { %v155_v5 = vadd.f32 %v154_v63, %v124_v20  ;;  %v663_v20 = vsub.f32 %v470_v52, %v501_v17  ;;  %v139_v50 = vmul.f32 %v657_v18, %v657_v18 }
  0xd0   :  { %v156_v9 = vadd.f32 %v155_v5, %v125_v22  ;;  %v669_v22 = vsub.f32 %v476_v54, %v501_v17  ;;  %v140_v52 = vmul.f32 %v663_v20, %v663_v20 }
  0xd2   :  { %v157_v13 = vadd.f32 %v156_v9, %v126_v24  ;;  %v675_v24 = vsub.f32 %v482_v56, %v501_v17  ;;  %v141_v54 = vmul.f32 %v669_v22, %v669_v22 }
  0xd4   :  { %v158_v27 = vadd.f32 %v157_v13, %v127_v26  ;;  %v681_v26 = vsub.f32 %v488_v58, %v501_v17  ;;  %v142_v56 = vmul.f32 %v675_v24, %v675_v24 }
  0xd6   :  { %v159_v31 = vadd.f32 %v158_v27, %v128_v28  ;;  %v687_v28 = vsub.f32 %v494_v60, %v501_v17 }
  0xd8   :  { %v160_v35 = vadd.f32 %v159_v31, %v129_v30  ;;  %v143_v30 = vmul.f32 %v681_v26, %v681_v26  ;;  %v144_v58 = vmul.f32 %v687_v28, %v687_v28 }
  0xda   :  { %v161_v37 = vadd.f32 %v160_v35, %v130_v32 }
  0xdc   :  { %v162_v41 = vadd.f32 %v161_v37, %v131_v34 }
  0xde   :  { %v163_v45 = vadd.f32 %v162_v41, %v132_v36 }
  0xe0   :  { %v164_v49 = vadd.f32 %v163_v45, %v133_v38 }
  0xe2   :  { %v165_v53 = vadd.f32 %v164_v49, %v134_v40 }
  0xe4   :  { %v166_v57 = vadd.f32 %v165_v53, %v135_v42 }
  0xe6   :  { %v167_v61 = vadd.f32 %v166_v57, %v136_v44 }
  0xe8   :  { %v168_v63 = vadd.f32 %v167_v61, %v137_v46 }
  0xea   :  { %v169_v5 = vadd.f32 %v168_v63, %v138_v48 }
  0xec   :  { %v170_v9 = vadd.f32 %v169_v5, %v139_v50 }
  0xee   :  { %v171_v13 = vadd.f32 %v170_v9, %v140_v52 }
  0xf0   :  { %v172_v27 = vadd.f32 %v171_v13, %v141_v54 }
  0xf2   :  { %v173_v31 = vadd.f32 %v172_v27, %v142_v56 }
  0xf4   :  { %v174_v32 = vadd.f32 %v173_v31, %v143_v30 }
  0xf6   :  { %v175_v35 = vadd.f32 %v174_v32, %v144_v58 }
  0xf8   :  { %176 = vadd.xlane.f32.xlu0 %v175_v35 }
 0x16b   :  { %v177_v34 = vpop.xlane.xlu0 %176 }
 0x16c   :  { %v178_v37 = vmul.f32 %v177_v34, %v498_v15 }
 0x16e   :  { %v179_v36 = vadd.f32 1e-05, %v178_v37 }
 0x170   :  { %293 = vrsqrt.f32 %v179_v36  ;;  %vm186_vm2 = vweird.f32 %v179_v36 }
 0x176   :  { %v294_v60 = vpop.eup %293 }
 0x177   :  { %v181_v17 = vmul.f32 %v294_v60, %v179_v36  ;;  %vm187_vm1 = vweird.f32 %v294_v60 }
 0x178   :  { %vm188_vm3 = vmor %vm186_vm2, %vm187_vm1 }
 0x179   :  { %v182_v41 = vmul.f32 %v294_v60, %v181_v17 }
 0x17b   :  { %v183_v38 = vmul.f32 0.5, %v182_v41 }
 0x17d   :  { %v184_v45 = vsub.f32 1.5, %v183_v38 }
 0x17f   :  { %v185_v40 = vmul.f32 %v294_v60, %v184_v45 }
 0x181   :  { %v696_v49 = vsel %vm188_vm3, %v294_v60, %v185_v40 }
 0x182   :  { %v190_v42 = vmul.f32 %v696_v49, %v505_v19  ;;  %v191_v53 = vmul.f32 %v696_v49, %v509_v21  ;;  %v192_v15 = vmul.f32 %v696_v49, %v513_v23  ;;  %v193_v44 = vmul.f32 %v696_v49, %v521_v29 }
 0x183   :  { %v194_v57 = vmul.f32 %v696_v49, %v525_v0  ;;  %v195_v46 = vmul.f32 %v696_v49, %v531_v2  ;;  %v196_v61 = vmul.f32 %v696_v49, %v537_v4  ;;  %v197_v19 = vmul.f32 %v696_v49, %v543_v39 }
 0x184   :  { %v198_v21 = vmul.f32 %v696_v49, %v549_v43  ;;  %v199_v23 = vmul.f32 %v696_v49, %v555_v47  ;;  %v200_v29 = vmul.f32 %v696_v49, %v561_v51  ;;  %v201_v0 = vmul.f32 %v696_v49, %v567_v55 }
 0x185   :  { %v202_v2 = vmul.f32 %v696_v49, %v573_v59  ;;  %v203_v4 = vmul.f32 %v696_v49, %v579_v62  ;;  %v204_v39 = vmul.f32 %v696_v49, %v585_v3  ;;  %v205_v43 = vmul.f32 %v696_v49, %v591_v7 }
 0x186   :  { %v206_v47 = vmul.f32 %v696_v49, %v597_v11  ;;  %v207_v51 = vmul.f32 %v696_v49, %v603_v25  ;;  %v208_v55 = vmul.f32 %v696_v49, %v609_v1  ;;  %v209_v59 = vmul.f32 %v696_v49, %v615_v33 }
 0x187   :  { %v210_v62 = vmul.f32 %v696_v49, %v621_v6  ;;  %v211_v3 = vmul.f32 %v696_v49, %v627_v8  ;;  %v222_v48 = vmax.f32 %v190_v42, 0.0  ;;  %v223_v7 = vmax.f32 %v191_v53, 0.0 }
 0x188   :  { %v224_v63 = vmax.f32 %v192_v15, 0.0  ;;  %v225_v50 = vmax.f32 %v193_v44, 0.0  ;;  %v226_v11 = vmax.f32 %v194_v57, 0.0  ;;  %v227_v5 = vmax.f32 %v195_v46, 0.0 }
 0x189   :  { %v212_v25 = vmul.f32 %v696_v49, %v633_v10  ;;  %v213_v1 = vmul.f32 %v696_v49, %v639_v12  ;;  %v228_v52 = vmax.f32 %v196_v61, 0.0  ;;  %v229_v33 = vmax.f32 %v197_v19, 0.0 }
 0x18a   :  { %v214_v6 = vmul.f32 %v696_v49, %v645_v14  ;;  %v215_v8 = vmul.f32 %v696_v49, %v651_v16  ;;  %v230_v9 = vmax.f32 %v198_v21, 0.0  ;;  %v231_v54 = vmax.f32 %v199_v23, 0.0 }
 0x18b   :  { %v216_v13 = vmul.f32 %v696_v49, %v657_v18  ;;  %v232_v56 = vmax.f32 %v200_v29, 0.0  ;;  %v233_v27 = vmax.f32 %v201_v0, 0.0  ;;  %v234_v30 = vmax.f32 %v202_v2, 0.0 }
 0x18c   :  { %v235_v10 = vmax.f32 %v203_v4, 0.0  ;;  %v254_v31 = vpack.c.bf16 %v223_v7, %v222_v48  ;;  %v255_v58 = vpack.c.bf16 %v225_v50, %v224_v63  ;;  %v256_v12 = vpack.c.bf16 %v227_v5, %v226_v11 }
 0x18d   :  { %v217_v32 = vmul.f32 %v696_v49, %v663_v20  ;;  %v236_v35 = vmax.f32 %v204_v39, 0.0  ;;  %v237_v14 = vmax.f32 %v205_v43, 0.0  ;;  %v257_v34 = vpack.c.bf16 %v229_v33, %v228_v52 }
 0x18e   :  { %v218_v16 = vmul.f32 %v696_v49, %v669_v22  ;;  %v238_v37 = vmax.f32 %v206_v47, 0.0  ;;  %v239_v36 = vmax.f32 %v207_v51, 0.0  ;;  %v258_v60 = vpack.c.bf16 %v231_v54, %v230_v9  ;;  %270 = vst [vmem:[%s811_s1] sm:$0xff] %v254_v31 }
 0x18f   :  { %v219_v18 = vmul.f32 %v696_v49, %v675_v24  ;;  %v240_v17 = vmax.f32 %v208_v55, 0.0  ;;  %v241_v41 = vmax.f32 %v209_v59, 0.0  ;;  %v259_v38 = vpack.c.bf16 %v233_v27, %v232_v56  ;;  %271 = vst [vmem:[%s811_s1 + $0x8] sm:$0xff] %v255_v58 }
 0x190   :  { %v220_v20 = vmul.f32 %v696_v49, %v681_v26  ;;  %v242_v22 = vmax.f32 %v210_v62, 0.0  ;;  %v243_v45 = vmax.f32 %v211_v3, 0.0  ;;  %v260_v40 = vpack.c.bf16 %v235_v10, %v234_v30  ;;  %272 = vst [vmem:[%s811_s1 + $0x10] sm:$0xff] %v256_v12 }
 0x191   :  { %v221_v24 = vmul.f32 %v696_v49, %v687_v28  ;;  %v244_v42 = vmax.f32 %v212_v25, 0.0  ;;  %v245_v53 = vmax.f32 %v213_v1, 0.0  ;;  %v261_v15 = vpack.c.bf16 %v237_v14, %v236_v35  ;;  %273 = vst [vmem:[%s811_s1 + $0x18] sm:$0xff] %v257_v34 }
 0x192   :  { %v246_v44 = vmax.f32 %v214_v6, 0.0  ;;  %v247_v57 = vmax.f32 %v215_v8, 0.0  ;;  %v262_v26 = vpack.c.bf16 %v239_v36, %v238_v37  ;;  %274 = vst [vmem:[%s811_s1 + $0x20] sm:$0xff] %v258_v60  ;;  %v248_v46 = vmax.f32 %v216_v13, 0.0 }
 0x193   :  { %v249_v61 = vmax.f32 %v217_v32, 0.0  ;;  %v263_v19 = vpack.c.bf16 %v241_v41, %v240_v17  ;;  %275 = vst [vmem:[%s811_s1 + $0x28] sm:$0xff] %v259_v38  ;;  %v250_v28 = vmax.f32 %v218_v16, 0.0  ;;  %v251_v49 = vmax.f32 %v219_v18, 0.0 }
 0x194   :  { %v264_v21 = vpack.c.bf16 %v243_v45, %v242_v22  ;;  %276 = vst [vmem:[%s811_s1 + $0x30] sm:$0xff] %v260_v40  ;;  %v252_v23 = vmax.f32 %v220_v20, 0.0  ;;  %v253_v29 = vmax.f32 %v221_v24, 0.0  ;;  %v265_v0 = vpack.c.bf16 %v245_v53, %v244_v42 }
 0x195   :  { %277 = vst [vmem:[%s811_s1 + $0x38] sm:$0xff] %v261_v15  ;;  %v266_v2 = vpack.c.bf16 %v247_v57, %v246_v44  ;;  %v267_v4 = vpack.c.bf16 %v249_v61, %v248_v46  ;;  %v268_v39 = vpack.c.bf16 %v251_v49, %v250_v28 }
 0x196   :  { %278 = vst [vmem:[%s811_s1 + $0x40] sm:$0xff] %v262_v26  ;;  %v269_v43 = vpack.c.bf16 %v253_v29, %v252_v23 }
 0x197   :  { %279 = vst [vmem:[%s811_s1 + $0x48] sm:$0xff] %v263_v19 }
 0x198   :  { %280 = vst [vmem:[%s811_s1 + $0x50] sm:$0xff] %v264_v21 }
 0x199   :  { %281 = vst [vmem:[%s811_s1 + $0x58] sm:$0xff] %v265_v0 }
 0x19a   :  { %282 = vst [vmem:[%s811_s1 + $0x60] sm:$0xff] %v266_v2 }
 0x19b   :  { %283 = vst [vmem:[%s811_s1 + $0x68] sm:$0xff] %v267_v4 }
 0x19c   :  { %284 = vst [vmem:[%s811_s1 + $0x70] sm:$0xff] %v268_v39 }
 0x19d   :  { %285 = vst [vmem:[%s811_s1 + $0x78] sm:$0xff] %v269_v43 }

// kernel: resnet_encoder_forward.5
= control target key start
LH: loop header
LB: loop body
LE: loop exit
PB: predicated region body
PF: predicated region fallthrough
CT: control target
= control target key end

     0   :  { %s1528_s1 = inlined_call_operand.vmem [shape: bf16[128,1024], index: 1, kind: input, shape index: {}]   ;;  %s1529_s0 = inlined_call_operand.vmem [shape: bf16[32,128], index: 0, kind: input, shape index: {}]   ;;  %s1530_s2 = inlined_call_operand.vmem [shape: f32[32,1], index: 2, kind: input, shape index: {}]   ;;  %s1531_s3 = inlined_call_operand.vmem [shape: f32[32,1024], index: 3, kind: output, shape index: {}]  }
   0x1   :  { %v860_v0 = vld [vmem:[%s1528_s1 + $0x1c0] sm:$0xf]  ;;  %v948_v2 = vld [vmem:[%s1528_s1 + $0x1c4] sm:$0xf]  ;;  %v868_v5 = vld [vmem:[%s1528_s1 + $0x1c8] sm:$0xf] }
   0x2   :  { %v952_v1 = vld [vmem:[%s1528_s1 + $0x1dc] sm:$0xf0]  ;;  %v862_v4 = vld [vmem:[%s1528_s1 + $0x1e0] sm:$0xf0]  ;;  %v953_v6 = vld [vmem:[%s1528_s1 + $0x1e4] sm:$0xf0] }
   0x3   :  { %v861_v3 = vor.u32 %v952_v1, %v860_v0  ;;  %v865_v7 = vor.u32 %v948_v2, %v862_v4  ;;  %v869_v8 = vor.u32 %v953_v6, %v868_v5  ;;  %v949_v9 = vld [vmem:[%s1528_s1 + $0x1cc] sm:$0xf]  ;;  %v828_v11 = vld [vmem:[%s1528_s1 + $0x180] sm:$0xf]  ;;  %v940_v14 = vld [vmem:[%s1528_s1 + $0x184] sm:$0xf] }
   0x4   :  { %v870_v10 = vld [vmem:[%s1528_s1 + $0x1e8] sm:$0xf0]  ;;  %v944_v13 = vld [vmem:[%s1528_s1 + $0x19c] sm:$0xf0]  ;;  %v830_v15 = vld [vmem:[%s1528_s1 + $0x1a0] sm:$0xf0] }
   0x5   :  { %438 = vmatpush.bf16.msra.mxu0 %v861_v3  ;;  %v873_v12 = vor.u32 %v949_v9, %v870_v10  ;;  %457 = vmatpush.bf16.msra.mxu1 %v865_v7  ;;  %v829_v16 = vor.u32 %v944_v13, %v828_v11  ;;  %v833_v17 = vor.u32 %v940_v14, %v830_v15  ;;  %v836_v18 = vld [vmem:[%s1528_s1 + $0x188] sm:$0xf]  ;;  %v941_v20 = vld [vmem:[%s1528_s1 + $0x18c] sm:$0xf]  ;;  %v796_v23 = vld [vmem:[%s1528_s1 + $0x140] sm:$0xf] }
   0x6   :  { %476 = vmatpush.bf16.msra.mxu2 %v869_v8  ;;  %v945_v19 = vld [vmem:[%s1528_s1 + $0x1a4] sm:$0xf0]  ;;  %v838_v22 = vld [vmem:[%s1528_s1 + $0x1a8] sm:$0xf0]  ;;  %v936_v24 = vld [vmem:[%s1528_s1 + $0x15c] sm:$0xf0] }
   0x7   :  { %495 = vmatpush.bf16.msra.mxu3 %v873_v12  ;;  %v837_v21 = vor.u32 %v945_v19, %v836_v18  ;;  %v841_v25 = vor.u32 %v941_v20, %v838_v22  ;;  %v932_v26 = vld [vmem:[%s1528_s1 + $0x144] sm:$0xf]  ;;  %v804_v28 = vld [vmem:[%s1528_s1 + $0x148] sm:$0xf]  ;;  %v797_v29 = vor.u32 %v936_v24, %v796_v23  ;;  %v933_v31 = vld [vmem:[%s1528_s1 + $0x14c] sm:$0xf] }
   0x8   :  { %v798_v27 = vld [vmem:[%s1528_s1 + $0x160] sm:$0xf0]  ;;  %v937_v30 = vld [vmem:[%s1528_s1 + $0x164] sm:$0xf0]  ;;  %v806_v32 = vld [vmem:[%s1528_s1 + $0x168] sm:$0xf0] }
   0x9   :  { %439 = vmatpush.bf16.msra.mxu0 %v829_v16  ;;  %458 = vmatpush.bf16.msra.mxu1 %v833_v17  ;;  %v801_v33 = vor.u32 %v932_v26, %v798_v27  ;;  %v805_v34 = vor.u32 %v937_v30, %v804_v28  ;;  %v764_v35 = vld [vmem:[%s1528_s1 + $0x100] sm:$0xf]  ;;  %v924_v37 = vld [vmem:[%s1528_s1 + $0x104] sm:$0xf]  ;;  %v809_v38 = vor.u32 %v933_v31, %v806_v32  ;;  %v772_v40 = vld [vmem:[%s1528_s1 + $0x108] sm:$0xf] }
   0xa   :  { %477 = vmatpush.bf16.msra.mxu2 %v837_v21  ;;  %v928_v36 = vld [vmem:[%s1528_s1 + $0x11c] sm:$0xf0]  ;;  %v766_v39 = vld [vmem:[%s1528_s1 + $0x120] sm:$0xf0]  ;;  %v929_v41 = vld [vmem:[%s1528_s1 + $0x124] sm:$0xf0] }
   0xb   :  { %496 = vmatpush.bf16.msra.mxu3 %v841_v25  ;;  %v925_v42 = vld [vmem:[%s1528_s1 + $0x10c] sm:$0xf]  ;;  %v765_v44 = vor.u32 %v928_v36, %v764_v35  ;;  %v769_v45 = vor.u32 %v924_v37, %v766_v39  ;;  %v773_v46 = vor.u32 %v929_v41, %v772_v40  ;;  %v732_v47 = vld [vmem:[%s1528_s1 + $0xc0] sm:$0xf]  ;;  %v916_v49 = vld [vmem:[%s1528_s1 + $0xc4] sm:$0xf] }
   0xc   :  { %v774_v43 = vld [vmem:[%s1528_s1 + $0x128] sm:$0xf0]  ;;  %v920_v48 = vld [vmem:[%s1528_s1 + $0xdc] sm:$0xf0]  ;;  %v734_v51 = vld [vmem:[%s1528_s1 + $0xe0] sm:$0xf0] }
   0xd   :  { %440 = vmatpush.bf16.msra.mxu0 %v797_v29  ;;  %459 = vmatpush.bf16.msra.mxu1 %v801_v33  ;;  %v777_v50 = vor.u32 %v925_v42, %v774_v43  ;;  %v740_v52 = vld [vmem:[%s1528_s1 + $0xc8] sm:$0xf]  ;;  %v917_v54 = vld [vmem:[%s1528_s1 + $0xcc] sm:$0xf]  ;;  %v733_v56 = vor.u32 %v920_v48, %v732_v47  ;;  %v737_v57 = vor.u32 %v916_v49, %v734_v51  ;;  %v700_v59 = vld [vmem:[%s1528_s1 + $0x80] sm:$0xf] }
   0xe   :  { %478 = vmatpush.bf16.msra.mxu2 %v805_v34  ;;  %v921_v53 = vld [vmem:[%s1528_s1 + $0xe4] sm:$0xf0]  ;;  %v742_v55 = vld [vmem:[%s1528_s1 + $0xe8] sm:$0xf0]  ;;  %v912_v60 = vld [vmem:[%s1528_s1 + $0x9c] sm:$0xf0] }
   0xf   :  { %497 = vmatpush.bf16.msra.mxu3 %v809_v38  ;;  %v741_v58 = vor.u32 %v921_v53, %v740_v52  ;;  %v908_v61 = vld [vmem:[%s1528_s1 + $0x84] sm:$0xf]  ;;  %v745_v62 = vor.u32 %v917_v54, %v742_v55  ;;  %v708_v0 = vld [vmem:[%s1528_s1 + $0x88] sm:$0xf]  ;;  %v909_v2 = vld [vmem:[%s1528_s1 + $0x8c] sm:$0xf]  ;;  %v701_v4 = vor.u32 %v912_v60, %v700_v59 }
  0x10   :  { %v702_v63 = vld [vmem:[%s1528_s1 + $0xa0] sm:$0xf0]  ;;  %v913_v1 = vld [vmem:[%s1528_s1 + $0xa4] sm:$0xf0]  ;;  %v710_v3 = vld [vmem:[%s1528_s1 + $0xa8] sm:$0xf0] }
  0x11   :  { %441 = vmatpush.bf16.msra.mxu0 %v765_v44  ;;  %460 = vmatpush.bf16.msra.mxu1 %v769_v45  ;;  %v668_v5 = vld [vmem:[%s1528_s1 + $0x40] sm:$0xf]  ;;  %v705_v6 = vor.u32 %v908_v61, %v702_v63  ;;  %v709_v7 = vor.u32 %v913_v1, %v708_v0  ;;  %v900_v9 = vld [vmem:[%s1528_s1 + $0x44] sm:$0xf]  ;;  %v713_v11 = vor.u32 %v909_v2, %v710_v3  ;;  %v676_v12 = vld [vmem:[%s1528_s1 + $0x48] sm:$0xf] }
  0x12   :  { %479 = vmatpush.bf16.msra.mxu2 %v773_v46  ;;  %v904_v8 = vld [vmem:[%s1528_s1 + $0x5c] sm:$0xf0]  ;;  %v670_v10 = vld [vmem:[%s1528_s1 + $0x60] sm:$0xf0]  ;;  %v905_v13 = vld [vmem:[%s1528_s1 + $0x64] sm:$0xf0] }
  0x13   :  { %498 = vmatpush.bf16.msra.mxu3 %v777_v50  ;;  %v901_v14 = vld [vmem:[%s1528_s1 + $0x4c] sm:$0xf]  ;;  %v959_v16 = vmov 0   ;;  %v669_v17 = vor.u32 %v904_v8, %v668_v5  ;;  %v636_v18 = vld [vmem:[%s1528_s1] sm:$0xf]  ;;  %v673_v19 = vor.u32 %v900_v9, %v670_v10  ;;  %v677_v20 = vor.u32 %v905_v13, %v676_v12 }
  0x14   :  { %v678_v15 = vld [vmem:[%s1528_s1 + $0x68] sm:$0xf0]  ;;  %957 = vset.pattern.permute.xlu0 %v959_v16  ;;  %958 = vset.pattern.permute.xlu1 %v959_v16  ;;  %v896_v21 = vld [vmem:[%s1528_s1 + $0x1c] sm:$0xf0]  ;;  %v892_v22 = vld [vmem:[%s1528_s1 + $0x4] sm:$0xf] }
  0x15   :  { %442 = vmatpush.bf16.msra.mxu0 %v733_v56  ;;  %461 = vmatpush.bf16.msra.mxu1 %v737_v57  ;;  %v638_v23 = vld [vmem:[%s1528_s1 + $0x20] sm:$0xf0]  ;;  %v681_v24 = vor.u32 %v901_v14, %v678_v15  ;;  %v644_v25 = vld [vmem:[%s1528_s1 + $0x8] sm:$0xf]  ;;  %v893_v27 = vld [vmem:[%s1528_s1 + $0xc] sm:$0xf]  ;;  %v637_v31 = vor.u32 %v896_v21, %v636_v18 }
  0x16   :  { %480 = vmatpush.bf16.msra.mxu2 %v741_v58  ;;  %v897_v26 = vld [vmem:[%s1528_s1 + $0x24] sm:$0xf0]  ;;  %v646_v28 = vld [vmem:[%s1528_s1 + $0x28] sm:$0xf0]  ;;  %v884_v29 = vld [vmem:[%s1528_s1 + $0x1d8] sm:$0xf]  ;;  %v641_v34 = vor.u32 %v892_v22, %v638_v23 }
  0x17   :  { %499 = vmatpush.bf16.msra.mxu3 %v745_v62  ;;  %v955_v30 = vld [vmem:[%s1528_s1 + $0x1f4] sm:$0xf0]  ;;  %v951_v32 = vld [vmem:[%s1528_s1 + $0x1dc] sm:$0xf]  ;;  %v645_v35 = vor.u32 %v897_v26, %v644_v25  ;;  %v1187_v36 = vld [vmem:[%s1529_s0] sm:$0xff]  ;;  %v649_v38 = vor.u32 %v893_v27, %v646_v28 }
  0x18   :  { %v886_v33 = vld [vmem:[%s1528_s1 + $0x1f8] sm:$0xf0]  ;;  %v876_v37 = vld [vmem:[%s1528_s1 + $0x1d0] sm:$0xf]  ;;  %v885_v39 = vor.u32 %v955_v30, %v884_v29  ;;  %v950_v41 = vld [vmem:[%s1528_s1 + $0x1d4] sm:$0xf] }
  0x19   :  { %443 = vmatpush.bf16.msra.mxu0 %v701_v4  ;;  %462 = vmatpush.bf16.msra.mxu1 %v705_v6  ;;  %v954_v40 = vld [vmem:[%s1528_s1 + $0x1ec] sm:$0xf0]  ;;  %v82_v42 = vld [vmem:[%s1530_s2] sm:$0xff]  ;;  %v889_v43 = vor.u32 %v951_v32, %v886_v33  ;;  %v878_v44 = vld [vmem:[%s1528_s1 + $0x1f0] sm:$0xf0] }
  0x1a   :  { %481 = vmatpush.bf16.msra.mxu2 %v709_v7  ;;  %v852_v45 = vld [vmem:[%s1528_s1 + $0x198] sm:$0xf]  ;;  %88 = vperm.xlu0 %957, %v82_v42   ;;  %v943_v47 = vld [vmem:[%s1528_s1 + $0x19c] sm:$0xf]  ;;  %v877_v49 = vor.u32 %v954_v40, %v876_v37  ;;  %v881_v50 = vor.u32 %v950_v41, %v878_v44  ;;  %v844_v52 = vld [vmem:[%s1528_s1 + $0x190] sm:$0xf] }
  0x1b   :  { %500 = vmatpush.bf16.msra.mxu3 %v713_v11  ;;  %v947_v46 = vld [vmem:[%s1528_s1 + $0x1b4] sm:$0xf0]  ;;  %v854_v48 = vld [vmem:[%s1528_s1 + $0x1b8] sm:$0xf0]  ;;  %v946_v53 = vld [vmem:[%s1528_s1 + $0x1ac] sm:$0xf0] }
  0x1c   :  { %v853_v51 = vor.u32 %v947_v46, %v852_v45  ;;  %v942_v54 = vld [vmem:[%s1528_s1 + $0x194] sm:$0xf]  ;;  %v857_v55 = vor.u32 %v943_v47, %v854_v48  ;;  %v820_v57 = vld [vmem:[%s1528_s1 + $0x158] sm:$0xf]  ;;  %v935_v59 = vld [vmem:[%s1528_s1 + $0x15c] sm:$0xf]  ;;  %v845_v62 = vor.u32 %v946_v53, %v844_v52 }
  0x1d   :  { %444 = vmatpush.bf16.msra.mxu0 %v669_v17  ;;  %463 = vmatpush.bf16.msra.mxu1 %v673_v19  ;;  %v846_v56 = vld [vmem:[%s1528_s1 + $0x1b0] sm:$0xf0]  ;;  %v939_v58 = vld [vmem:[%s1528_s1 + $0x174] sm:$0xf0]  ;;  %v822_v60 = vld [vmem:[%s1528_s1 + $0x178] sm:$0xf0] }
  0x1e   :  { %482 = vmatpush.bf16.msra.mxu2 %v677_v20  ;;  %v83_v61 = vld [vmem:[%s1530_s2 + $0x8] sm:$0xff]  ;;  %v849_v63 = vor.u32 %v942_v54, %v846_v56  ;;  %v821_v0 = vor.u32 %v939_v58, %v820_v57  ;;  %v812_v1 = vld [vmem:[%s1528_s1 + $0x150] sm:$0xf]  ;;  %v934_v3 = vld [vmem:[%s1528_s1 + $0x154] sm:$0xf]  ;;  %v825_v4 = vor.u32 %v935_v59, %v822_v60 }
  0x1f   :  { %501 = vmatpush.bf16.msra.mxu3 %v681_v24  ;;  %v938_v2 = vld [vmem:[%s1528_s1 + $0x16c] sm:$0xf0]  ;;  %v814_v5 = vld [vmem:[%s1528_s1 + $0x170] sm:$0xf0]  ;;  %v788_v6 = vld [vmem:[%s1528_s1 + $0x118] sm:$0xf] }
  0x20   :  { %v931_v7 = vld [vmem:[%s1528_s1 + $0x134] sm:$0xf0]  ;;  %v927_v8 = vld [vmem:[%s1528_s1 + $0x11c] sm:$0xf]  ;;  %v813_v10 = vor.u32 %v938_v2, %v812_v1  ;;  %v780_v11 = vld [vmem:[%s1528_s1 + $0x110] sm:$0xf]  ;;  %v817_v12 = vor.u32 %v934_v3, %v814_v5 }
  0x21   :  { %445 = vmatpush.bf16.msra.mxu0 %v637_v31  ;;  %464 = vmatpush.bf16.msra.mxu1 %v641_v34  ;;  %v790_v9 = vld [vmem:[%s1528_s1 + $0x138] sm:$0xf0]  ;;  %v789_v13 = vor.u32 %v931_v7, %v788_v6  ;;  %v930_v14 = vld [vmem:[%s1528_s1 + $0x12c] sm:$0xf0]  ;;  %v926_v15 = vld [vmem:[%s1528_s1 + $0x114] sm:$0xf] }
  0x22   :  { %483 = vmatpush.bf16.msra.mxu2 %v645_v35  ;;  %93 = vperm.xlu0 %957, %v83_v61   ;;  %v84_v16 = vld [vmem:[%s1530_s2 + $0x10] sm:$0xff]  ;;  %v793_v17 = vor.u32 %v927_v8, %v790_v9  ;;  %v756_v19 = vld [vmem:[%s1528_s1 + $0xd8] sm:$0xf]  ;;  %v919_v21 = vld [vmem:[%s1528_s1 + $0xdc] sm:$0xf]  ;;  %v781_v23 = vor.u32 %v930_v14, %v780_v11 }
  0x23   :  { %502 = vmatpush.bf16.msra.mxu3 %v649_v38  ;;  %v782_v18 = vld [vmem:[%s1528_s1 + $0x130] sm:$0xf0]  ;;  %v923_v20 = vld [vmem:[%s1528_s1 + $0xf4] sm:$0xf0]  ;;  %98 = vperm.xlu1 %958, %v84_v16   ;;  %v758_v22 = vld [vmem:[%s1528_s1 + $0xf8] sm:$0xf0] }
  0x24   :  { %446 = vmatmul.bf16.vlgmr.msra.gmra.mxu0 %v1187_v36  ;;  %465 = vmatmul.bf16.vlgmr.msra.gmra.mxu1 %v1187_v36  ;;  %v1301_v24 = vld [vmem:[%s1529_s0 + $0x8] sm:$0xff]  ;;  %v785_v25 = vor.u32 %v926_v15, %v782_v18  ;;  %v757_v26 = vor.u32 %v923_v20, %v756_v19  ;;  %v748_v27 = vld [vmem:[%s1528_s1 + $0xd0] sm:$0xf]  ;;  %v918_v29 = vld [vmem:[%s1528_s1 + $0xd4] sm:$0xf]  ;;  %v761_v30 = vor.u32 %v919_v21, %v758_v22 }
  0x25   :  { %484 = vmatmul.bf16.vlgmr.msra.gmra.mxu2 %v1187_v36  ;;  %514 = vmatpush.bf16.msrb.mxu0 %v877_v49  ;;  %v922_v28 = vld [vmem:[%s1528_s1 + $0xec] sm:$0xf0]  ;;  %v750_v31 = vld [vmem:[%s1528_s1 + $0xf0] sm:$0xf0]  ;;  %v724_v32 = vld [vmem:[%s1528_s1 + $0x98] sm:$0xf] }
  0x26   :  { %552 = vmatpush.bf16.msrb.mxu2 %v885_v39  ;;  %503 = vmatmul.bf16.vlgmr.msra.gmra.mxu3 %v1187_v36  ;;  %v915_v33 = vld [vmem:[%s1528_s1 + $0xb4] sm:$0xf0]  ;;  %v911_v34 = vld [vmem:[%s1528_s1 + $0x9c] sm:$0xf]  ;;  %v749_v37 = vor.u32 %v922_v28, %v748_v27  ;;  %v753_v38 = vor.u32 %v918_v29, %v750_v31  ;;  %v716_v40 = vld [vmem:[%s1528_s1 + $0x90] sm:$0xf] }
  0x27   :  { %571 = vmatpush.bf16.msrb.mxu3 %v889_v43  ;;  %533 = vmatpush.bf16.msrb.mxu1 %v881_v50  ;;  %v726_v35 = vld [vmem:[%s1528_s1 + $0xb8] sm:$0xf0]  ;;  %v725_v39 = vor.u32 %v915_v33, %v724_v32  ;;  %v914_v41 = vld [vmem:[%s1528_s1 + $0xac] sm:$0xf0]  ;;  %v910_v42 = vld [vmem:[%s1528_s1 + $0x94] sm:$0xf] }
  0x28   :  { %v729_v43 = vor.u32 %v911_v34, %v726_v35  ;;  %v718_v44 = vld [vmem:[%s1528_s1 + $0xb0] sm:$0xf0]  ;;  %v692_v45 = vld [vmem:[%s1528_s1 + $0x58] sm:$0xf]  ;;  %v903_v47 = vld [vmem:[%s1528_s1 + $0x5c] sm:$0xf]  ;;  %v717_v50 = vor.u32 %v914_v41, %v716_v40 }
  0x29   :  { %515 = vmatpush.bf16.msrb.mxu0 %v845_v62  ;;  %v907_v46 = vld [vmem:[%s1528_s1 + $0x74] sm:$0xf0]  ;;  %v694_v48 = vld [vmem:[%s1528_s1 + $0x78] sm:$0xf0]  ;;  %v684_v53 = vld [vmem:[%s1528_s1 + $0x50] sm:$0xf] }
  0x2a   :  { %553 = vmatpush.bf16.msrb.mxu2 %v853_v51  ;;  %v85_v49 = vld [vmem:[%s1530_s2 + $0x18] sm:$0xff]  ;;  %v721_v51 = vor.u32 %v910_v42, %v718_v44  ;;  %v693_v52 = vor.u32 %v907_v46, %v692_v45  ;;  %v906_v54 = vld [vmem:[%s1528_s1 + $0x6c] sm:$0xf0]  ;;  %v697_v56 = vor.u32 %v903_v47, %v694_v48  ;;  %v686_v57 = vld [vmem:[%s1528_s1 + $0x70] sm:$0xf0] }
  0x2b   :  { %572 = vmatpush.bf16.msrb.mxu3 %v857_v55  ;;  %534 = vmatpush.bf16.msrb.mxu1 %v849_v63  ;;  %v902_v55 = vld [vmem:[%s1528_s1 + $0x54] sm:$0xf]  ;;  %v660_v58 = vld [vmem:[%s1528_s1 + $0x18] sm:$0xf]  ;;  %v895_v60 = vld [vmem:[%s1528_s1 + $0x1c] sm:$0xf]  ;;  %v685_v62 = vor.u32 %v906_v54, %v684_v53 }
  0x2c   :  { %v899_v59 = vld [vmem:[%s1528_s1 + $0x34] sm:$0xf0]  ;;  %103 = vperm.xlu1 %958, %v85_v49   ;;  %v662_v61 = vld [vmem:[%s1528_s1 + $0x38] sm:$0xf0]  ;;  %v689_v63 = vor.u32 %v902_v55, %v686_v57  ;;  %v652_v1 = vld [vmem:[%s1528_s1 + $0x10] sm:$0xf] }
  0x2d   :  { %516 = vmatpush.bf16.msrb.mxu0 %v813_v10  ;;  %v898_v2 = vld [vmem:[%s1528_s1 + $0x2c] sm:$0xf0]  ;;  %v665_v3 = vor.u32 %v895_v60, %v662_v61  ;;  %v654_v5 = vld [vmem:[%s1528_s1 + $0x30] sm:$0xf0] }
  0x2e   :  { %554 = vmatpush.bf16.msrb.mxu2 %v821_v0  ;;  %v661_v0 = vor.u32 %v899_v59, %v660_v58  ;;  %v653_v6 = vor.u32 %v898_v2, %v652_v1 }
  0x2f   :  { %573 = vmatpush.bf16.msrb.mxu3 %v825_v4  ;;  %535 = vmatpush.bf16.msrb.mxu1 %v817_v12  ;;  %v894_v4 = vld [vmem:[%s1528_s1 + $0x14] sm:$0xf] }
  0x30   :  { %v657_v7 = vor.u32 %v894_v4, %v654_v5 }
  0x31   :  { %517 = vmatpush.bf16.msrb.mxu0 %v781_v23 }
  0x32   :  { %555 = vmatpush.bf16.msrb.mxu2 %v789_v13 }
  0x33   :  { %574 = vmatpush.bf16.msrb.mxu3 %v793_v17  ;;  %536 = vmatpush.bf16.msrb.mxu1 %v785_v25 }
  0x34   :  { %451 = vmatmul.bf16.gmra.mxu0 %v1301_v24  ;;  %470 = vmatmul.bf16.gmra.mxu1 %v1301_v24 }
  0x35   :  { %489 = vmatmul.bf16.gmra.mxu2 %v1301_v24  ;;  %518 = vmatpush.bf16.msrb.mxu0 %v749_v37 }
  0x36   :  { %556 = vmatpush.bf16.msrb.mxu2 %v757_v26  ;;  %508 = vmatmul.bf16.gmra.mxu3 %v1301_v24 }
  0x37   :  { %575 = vmatpush.bf16.msrb.mxu3 %v761_v30  ;;  %537 = vmatpush.bf16.msrb.mxu1 %v753_v38 }
  0x39   :  { %519 = vmatpush.bf16.msrb.mxu0 %v717_v50 }
  0x3a   :  { %557 = vmatpush.bf16.msrb.mxu2 %v725_v39 }
  0x3b   :  { %576 = vmatpush.bf16.msrb.mxu3 %v729_v43  ;;  %538 = vmatpush.bf16.msrb.mxu1 %v721_v51 }
  0x3d   :  { %520 = vmatpush.bf16.msrb.mxu0 %v685_v62 }
  0x3e   :  { %558 = vmatpush.bf16.msrb.mxu2 %v693_v52 }
  0x3f   :  { %577 = vmatpush.bf16.msrb.mxu3 %v697_v56  ;;  %539 = vmatpush.bf16.msrb.mxu1 %v689_v63 }
  0x41   :  { %521 = vmatpush.bf16.msrb.mxu0 %v653_v6 }
  0x42   :  { %559 = vmatpush.bf16.msrb.mxu2 %v661_v0 }
  0x43   :  { %578 = vmatpush.bf16.msrb.mxu3 %v665_v3  ;;  %540 = vmatpush.bf16.msrb.mxu1 %v657_v7 }
  0x44   :  { %522 = vmatmul.bf16.vlgmr.msrb.gmra.mxu0 %v1187_v36 }
  0x45   :  { %560 = vmatmul.bf16.vlgmr.msrb.gmra.mxu2 %v1187_v36 }
  0x46   :  { %541 = vmatmul.bf16.vlgmr.msrb.gmra.mxu1 %v1187_v36  ;;  %579 = vmatmul.bf16.vlgmr.msrb.gmra.mxu3 %v1187_v36 }
  0x54   :  { %527 = vmatmul.bf16.gmra.mxu0 %v1301_v24 }
  0x55   :  { %565 = vmatmul.bf16.gmra.mxu2 %v1301_v24 }
  0x56   :  { %546 = vmatmul.bf16.gmra.mxu1 %v1301_v24  ;;  %584 = vmatmul.bf16.gmra.mxu3 %v1301_v24 }
  0x8c   :  { %v89_v8 = vpop.permute.xlu0 %88 }
  0x94   :  { %v1408_v36 = vpop.permute.xlu0 %93 }
  0x95   :  { %v1421_v21 = vpop.permute.xlu1 %98 }
  0x9e   :  { %v1442_v30 = vpop.permute.xlu1 %103 }
  0xa1   :  { %v447_v9 = vpop.f32.mrf.mxu0  ;;  %v466_v11 = vpop.f32.mrf.mxu1 }
  0xa2   :  { %v448_v10 = vadd.f32 %v447_v9, %v89_v8  ;;  %v467_v12 = vadd.f32 %v466_v11, %v89_v8 }
  0xa4   :  { %590 = vst [vmem:[%s1531_s3] sm:$0xff] %v448_v10 }
  0xa5   :  { %591 = vst [vmem:[%s1531_s3 + $0x8] sm:$0xff] %v467_v12 }
  0xa8   :  { %v485_v13 = vpop.f32.mrf.mxu2 }
  0xa9   :  { %v486_v14 = vadd.f32 %v485_v13, %v89_v8  ;;  %v504_v15 = vpop.f32.mrf.mxu3  ;;  %v449_v16 = vpop.f32.mrf.mxu0 }
  0xaa   :  { %v505_v17 = vadd.f32 %v504_v15, %v89_v8  ;;  %v450_v18 = vadd.f32 %v449_v16, %v1408_v36  ;;  %v468_v19 = vpop.f32.mrf.mxu1 }
  0xab   :  { %592 = vst [vmem:[%s1531_s3 + $0x10] sm:$0xff] %v486_v14  ;;  %v469_v20 = vadd.f32 %v468_v19, %v1408_v36 }
  0xac   :  { %593 = vst [vmem:[%s1531_s3 + $0x18] sm:$0xff] %v505_v17 }
  0xad   :  { %598 = vst [vmem:[%s1531_s3 + $0x40] sm:$0xff] %v450_v18 }
  0xae   :  { %599 = vst [vmem:[%s1531_s3 + $0x48] sm:$0xff] %v469_v20 }
  0xb0   :  { %v487_v22 = vpop.f32.mrf.mxu2 }
  0xb1   :  { %v488_v23 = vadd.f32 %v487_v22, %v1408_v36  ;;  %v506_v24 = vpop.f32.mrf.mxu3  ;;  %v452_v25 = vpop.f32.mrf.mxu0 }
  0xb2   :  { %v507_v26 = vadd.f32 %v506_v24, %v1408_v36  ;;  %v453_v27 = vadd.f32 %v452_v25, %v1421_v21  ;;  %v471_v28 = vpop.f32.mrf.mxu1 }
  0xb3   :  { %600 = vst [vmem:[%s1531_s3 + $0x50] sm:$0xff] %v488_v23  ;;  %v472_v29 = vadd.f32 %v471_v28, %v1421_v21 }
  0xb4   :  { %601 = vst [vmem:[%s1531_s3 + $0x58] sm:$0xff] %v507_v26 }
  0xb5   :  { %606 = vst [vmem:[%s1531_s3 + $0x80] sm:$0xff] %v453_v27 }
  0xb6   :  { %607 = vst [vmem:[%s1531_s3 + $0x88] sm:$0xff] %v472_v29 }
  0xb8   :  { %v490_v31 = vpop.f32.mrf.mxu2 }
  0xb9   :  { %v491_v32 = vadd.f32 %v490_v31, %v1421_v21  ;;  %v509_v33 = vpop.f32.mrf.mxu3  ;;  %v454_v34 = vpop.f32.mrf.mxu0 }
  0xba   :  { %v510_v35 = vadd.f32 %v509_v33, %v1421_v21  ;;  %v455_v37 = vadd.f32 %v454_v34, %v1442_v30  ;;  %v473_v38 = vpop.f32.mrf.mxu1 }
  0xbb   :  { %608 = vst [vmem:[%s1531_s3 + $0x90] sm:$0xff] %v491_v32  ;;  %v474_v39 = vadd.f32 %v473_v38, %v1442_v30 }
  0xbc   :  { %609 = vst [vmem:[%s1531_s3 + $0x98] sm:$0xff] %v510_v35 }
  0xbd   :  { %614 = vst [vmem:[%s1531_s3 + $0xc0] sm:$0xff] %v455_v37 }
  0xbe   :  { %615 = vst [vmem:[%s1531_s3 + $0xc8] sm:$0xff] %v474_v39 }
  0xc0   :  { %v492_v40 = vpop.f32.mrf.mxu2 }
  0xc1   :  { %v493_v41 = vadd.f32 %v492_v40, %v1442_v30  ;;  %v511_v42 = vpop.f32.mrf.mxu3  ;;  %v523_v44 = vpop.f32.mrf.mxu0 }
  0xc2   :  { %v512_v43 = vadd.f32 %v511_v42, %v1442_v30  ;;  %v524_v45 = vadd.f32 %v523_v44, %v89_v8 }
  0xc3   :  { %616 = vst [vmem:[%s1531_s3 + $0xd0] sm:$0xff] %v493_v41  ;;  %v542_v46 = vpop.f32.mrf.mxu1 }
  0xc4   :  { %617 = vst [vmem:[%s1531_s3 + $0xd8] sm:$0xff] %v512_v43  ;;  %v543_v47 = vadd.f32 %v542_v46, %v89_v8 }
  0xc5   :  { %594 = vst [vmem:[%s1531_s3 + $0x20] sm:$0xff] %v524_v45 }
  0xc6   :  { %595 = vst [vmem:[%s1531_s3 + $0x28] sm:$0xff] %v543_v47 }
  0xc8   :  { %v561_v48 = vpop.f32.mrf.mxu2 }
  0xc9   :  { %v562_v49 = vadd.f32 %v561_v48, %v89_v8  ;;  %v580_v50 = vpop.f32.mrf.mxu3  ;;  %v525_v52 = vpop.f32.mrf.mxu0 }
  0xca   :  { %v581_v51 = vadd.f32 %v580_v50, %v89_v8  ;;  %v526_v53 = vadd.f32 %v525_v52, %v1408_v36 }
  0xcb   :  { %596 = vst [vmem:[%s1531_s3 + $0x30] sm:$0xff] %v562_v49  ;;  %v544_v54 = vpop.f32.mrf.mxu1 }
  0xcc   :  { %597 = vst [vmem:[%s1531_s3 + $0x38] sm:$0xff] %v581_v51  ;;  %v545_v55 = vadd.f32 %v544_v54, %v1408_v36 }
  0xcd   :  { %602 = vst [vmem:[%s1531_s3 + $0x60] sm:$0xff] %v526_v53 }
  0xce   :  { %603 = vst [vmem:[%s1531_s3 + $0x68] sm:$0xff] %v545_v55 }
  0xd0   :  { %v563_v56 = vpop.f32.mrf.mxu2 }
  0xd1   :  { %v564_v57 = vadd.f32 %v563_v56, %v1408_v36  ;;  %v582_v58 = vpop.f32.mrf.mxu3  ;;  %v528_v60 = vpop.f32.mrf.mxu0 }
  0xd2   :  { %v583_v59 = vadd.f32 %v582_v58, %v1408_v36  ;;  %v529_v61 = vadd.f32 %v528_v60, %v1421_v21 }
  0xd3   :  { %604 = vst [vmem:[%s1531_s3 + $0x70] sm:$0xff] %v564_v57  ;;  %v547_v62 = vpop.f32.mrf.mxu1 }
  0xd4   :  { %605 = vst [vmem:[%s1531_s3 + $0x78] sm:$0xff] %v583_v59  ;;  %v548_v63 = vadd.f32 %v547_v62, %v1421_v21 }
  0xd5   :  { %610 = vst [vmem:[%s1531_s3 + $0xa0] sm:$0xff] %v529_v61 }
  0xd6   :  { %611 = vst [vmem:[%s1531_s3 + $0xa8] sm:$0xff] %v548_v63 }
  0xd8   :  { %v566_v0 = vpop.f32.mrf.mxu2 }
  0xd9   :  { %v567_v1 = vadd.f32 %v566_v0, %v1421_v21  ;;  %v585_v2 = vpop.f32.mrf.mxu3  ;;  %v530_v4 = vpop.f32.mrf.mxu0 }
  0xda   :  { %v586_v3 = vadd.f32 %v585_v2, %v1421_v21  ;;  %v531_v5 = vadd.f32 %v530_v4, %v1442_v30 }
  0xdb   :  { %612 = vst [vmem:[%s1531_s3 + $0xb0] sm:$0xff] %v567_v1  ;;  %v549_v6 = vpop.f32.mrf.mxu1 }
  0xdc   :  { %613 = vst [vmem:[%s1531_s3 + $0xb8] sm:$0xff] %v586_v3  ;;  %v550_v7 = vadd.f32 %v549_v6, %v1442_v30 }
  0xdd   :  { %618 = vst [vmem:[%s1531_s3 + $0xe0] sm:$0xff] %v531_v5 }
  0xde   :  { %619 = vst [vmem:[%s1531_s3 + $0xe8] sm:$0xff] %v550_v7 }
  0xe0   :  { %v568_v8 = vpop.f32.mrf.mxu2 }
  0xe1   :  { %v569_v9 = vadd.f32 %v568_v8, %v1442_v30  ;;  %v587_v10 = vpop.f32.mrf.mxu3 }
  0xe2   :  { %v588_v11 = vadd.f32 %v587_v10, %v1442_v30 }
  0xe3   :  { %620 = vst [vmem:[%s1531_s3 + $0xf0] sm:$0xff] %v569_v9 }
  0xe4   :  { %621 = vst [vmem:[%s1531_s3 + $0xf8] sm:$0xff] %v588_v11 }

// kernel: resnet_encoder_forward.6
= control target key start
LH: loop header
LB: loop body
LE: loop exit
PB: predicated region body
PF: predicated region fallthrough
CT: control target
= control target key end

     0   :  { %v414_v56 = vmov 512.0   ;;  %s921_s0 = inlined_call_operand.vmem [shape: f32[64,512], index: 0, kind: input, shape index: {}]   ;;  %s922_s1 = inlined_call_operand.vmem [shape: bf16[64,512], index: 1, kind: output, shape index: {}]  }
   0x1   :  { %v428_v0 = vld [vmem:[%s921_s0 + $0x80] sm:$0xff]  ;;  %v433_v1 = vld [vmem:[%s921_s0 + $0x88] sm:$0xff]  ;;  %v438_v2 = vld [vmem:[%s921_s0 + $0x90] sm:$0xff]  ;;  %396 = vrcp.f32 %v414_v56 }
   0x2   :  { %v60_v3 = vadd.f32 %v433_v1, %v428_v0  ;;  %v445_v4 = vld [vmem:[%s921_s0 + $0x40] sm:$0xff]  ;;  %v450_v5 = vld [vmem:[%s921_s0 + $0x48] sm:$0xff]  ;;  %v455_v6 = vld [vmem:[%s921_s0 + $0x98] sm:$0xff] }
   0x3   :  { %v460_v7 = vld [vmem:[%s921_s0 + $0x50] sm:$0xff]  ;;  %v50_v8 = vadd.f32 %v450_v5, %v445_v4  ;;  %v467_v9 = vld [vmem:[%s921_s0] sm:$0xff]  ;;  %v473_v11 = vld [vmem:[%s921_s0 + $0x58] sm:$0xff] }
   0x4   :  { %v61_v10 = vadd.f32 %v60_v3, %v438_v2  ;;  %v478_v12 = vld [vmem:[%s921_s0 + $0x8] sm:$0xff]  ;;  %v483_v13 = vld [vmem:[%s921_s0 + $0x10] sm:$0xff]  ;;  %v491_v16 = vld [vmem:[%s921_s0 + $0xa0] sm:$0xff] }
   0x5   :  { %v51_v14 = vadd.f32 %v50_v8, %v460_v7  ;;  %v40_v15 = vadd.f32 %v478_v12, %v467_v9  ;;  %v496_v17 = vld [vmem:[%s921_s0 + $0xa8] sm:$0xff]  ;;  %v501_v18 = vld [vmem:[%s921_s0 + $0xb0] sm:$0xff]  ;;  %v507_v20 = vld [vmem:[%s921_s0 + $0x18] sm:$0xff] }
   0x6   :  { %v62_v19 = vadd.f32 %v61_v10, %v455_v6  ;;  %v65_v21 = vadd.f32 %v496_v17, %v491_v16  ;;  %v514_v22 = vld [vmem:[%s921_s0 + $0x60] sm:$0xff]  ;;  %v519_v23 = vld [vmem:[%s921_s0 + $0x68] sm:$0xff]  ;;  %v526_v26 = vld [vmem:[%s921_s0 + $0x70] sm:$0xff] }
   0x7   :  { %v52_v24 = vadd.f32 %v51_v14, %v473_v11  ;;  %v41_v25 = vadd.f32 %v40_v15, %v483_v13  ;;  %v55_v27 = vadd.f32 %v519_v23, %v514_v22  ;;  %v533_v28 = vld [vmem:[%s921_s0 + $0x20] sm:$0xff]  ;;  %v539_v30 = vld [vmem:[%s921_s0 + $0x28] sm:$0xff]  ;;  %v544_v31 = vld [vmem:[%s921_s0 + $0x30] sm:$0xff]  ;;  %v397_v57 = vpop.eup %396 }
   0x8   :  { %63 = vadd.xlane.f32.xlu2 %v62_v19  ;;  %v66_v29 = vadd.f32 %v65_v21, %v501_v18  ;;  %v550_v33 = vld [vmem:[%s921_s0 + $0xb8] sm:$0xff]  ;;  %v45_v35 = vadd.f32 %v539_v30, %v533_v28  ;;  %v563_v37 = vld [vmem:[%s921_s0 + $0xe0] sm:$0xff]  ;;  %v568_v38 = vld [vmem:[%s921_s0 + $0xe8] sm:$0xff]  ;;  %v81_v58 = vmul.f32 512.0, %v397_v57  ;;  %vm85_vm0 = vweird.f32 %v397_v57 }
   0x9   :  { %53 = vadd.xlane.f32.xlu1 %v52_v24  ;;  %v42_v32 = vadd.f32 %v41_v25, %v507_v20  ;;  %v56_v34 = vadd.f32 %v55_v27, %v526_v26  ;;  %v558_v36 = vld [vmem:[%s921_s0 + $0x78] sm:$0xff]  ;;  %v580_v42 = vld [vmem:[%s921_s0 + $0xc0] sm:$0xff]  ;;  %v585_v43 = vld [vmem:[%s921_s0 + $0xc8] sm:$0xff]  ;;  %v75_v45 = vadd.f32 %v568_v38, %v563_v37 }
   0xa   :  { %v46_v39 = vadd.f32 %v45_v35, %v544_v31  ;;  %v67_v40 = vadd.f32 %v66_v29, %v550_v33  ;;  %v575_v41 = vld [vmem:[%s921_s0 + $0x38] sm:$0xff]  ;;  %v593_v46 = vld [vmem:[%s921_s0 + $0xf0] sm:$0xff]  ;;  %v70_v48 = vadd.f32 %v585_v43, %v580_v42  ;;  %v82_v59 = vsub.f32 1.0, %v81_v58 }
   0xb   :  { %43 = vadd.xlane.f32.xlu0 %v42_v32  ;;  %v57_v44 = vadd.f32 %v56_v34, %v558_v36  ;;  %v601_v49 = vld [vmem:[%s921_s0 + $0xd0] sm:$0xff]  ;;  %v76_v50 = vadd.f32 %v75_v45, %v593_v46  ;;  %v607_v51 = vld [vmem:[%s921_s0 + $0xf8] sm:$0xff] }
   0xc   :  { %v47_v47 = vadd.f32 %v46_v39, %v575_v41  ;;  %v71_v52 = vadd.f32 %v70_v48, %v601_v49  ;;  %v613_v53 = vld [vmem:[%s921_s0 + $0xd8] sm:$0xff]  ;;  %v83_v60 = vmul.f32 %v397_v57, %v82_v59 }
   0xd   :  { %v77_v54 = vadd.f32 %v76_v50, %v607_v51 }
   0xe   :  { %v72_v55 = vadd.f32 %v71_v52, %v613_v53  ;;  %v84_v61 = vadd.f32 %v397_v57, %v83_v60 }
  0x10   :  { %68 = vadd.xlane.f32.xlu2 %v67_v40  ;;  %v617_v62 = vsel %vm85_vm0, %v397_v57, %v84_v61 }
  0x11   :  { %58 = vadd.xlane.f32.xlu1 %v57_v44 }
  0x13   :  { %48 = vadd.xlane.f32.xlu0 %v47_v47 }
  0x19   :  { %78 = vadd.xlane.f32.xlu1 %v77_v54 }
  0x1b   :  { %73 = vadd.xlane.f32.xlu0 %v72_v55 }
  0x7b   :  { %v64_v63 = vpop.xlane.xlu2 %63 }
  0x7c   :  { %v620_v3 = vmul.f32 %v617_v62, %v64_v63  ;;  %v54_v8 = vpop.xlane.xlu1 %53 }
  0x7d   :  { %v89_v10 = vmul.f32 %v617_v62, %v54_v8 }
  0x7e   :  { %v44_v14 = vpop.xlane.xlu0 %43  ;;  %v635_v25 = vsub.f32 %v428_v0, %v620_v3  ;;  %v652_v32 = vsub.f32 %v433_v1, %v620_v3 }
  0x7f   :  { %v624_v15 = vsub.f32 %v445_v4, %v89_v10  ;;  %v627_v19 = vsub.f32 %v450_v5, %v89_v10  ;;  %v87_v21 = vmul.f32 %v617_v62, %v44_v14  ;;  %v631_v24 = vsub.f32 %v460_v7, %v89_v10 }
  0x80   :  { %v638_v27 = vsub.f32 %v473_v11, %v89_v10  ;;  %v143_v45 = vmul.f32 %v635_v25, %v635_v25 }
  0x81   :  { %v641_v29 = vsub.f32 %v467_v9, %v87_v21  ;;  %v644_v4 = vsub.f32 %v478_v12, %v87_v21  ;;  %v135_v5 = vmul.f32 %v624_v15, %v624_v15  ;;  %v136_v7 = vmul.f32 %v627_v19, %v627_v19 }
  0x82   :  { %v137_v0 = vmul.f32 %v631_v24, %v631_v24  ;;  %v657_v11 = vsub.f32 %v483_v13, %v87_v21  ;;  %v660_v9 = vsub.f32 %v507_v20, %v87_v21  ;;  %v138_v34 = vmul.f32 %v638_v27, %v638_v27 }
  0x83   :  { %v69_v12 = vpop.xlane.xlu2 %68  ;;  %v169_v35 = vadd.f32 %v136_v7, %v135_v5  ;;  %v127_v39 = vmul.f32 %v641_v29, %v641_v29  ;;  %v128_v1 = vmul.f32 %v644_v4, %v644_v4  ;;  %v673_v20 = vsub.f32 %v438_v2, %v620_v3 }
  0x84   :  { %v92_v40 = vmul.f32 %v617_v62, %v69_v12  ;;  %v59_v44 = vpop.xlane.xlu1 %58  ;;  %v129_v13 = vmul.f32 %v657_v11, %v657_v11  ;;  %v130_v50 = vmul.f32 %v660_v9, %v660_v9 }
  0x85   :  { %v90_v47 = vmul.f32 %v617_v62, %v59_v44  ;;  %v170_v48 = vadd.f32 %v169_v35, %v137_v0  ;;  %v159_v52 = vadd.f32 %v128_v1, %v127_v39 }
  0x86   :  { %v681_v54 = vsub.f32 %v491_v16, %v92_v40  ;;  %v684_v55 = vsub.f32 %v496_v17, %v92_v40  ;;  %v49_v56 = vpop.xlane.xlu0 %48  ;;  %v687_v2 = vsub.f32 %v501_v18, %v92_v40  ;;  %v690_v57 = vsub.f32 %v550_v33, %v92_v40 }
  0x87   :  { %v693_v58 = vsub.f32 %v514_v22, %v90_v47  ;;  %v696_v59 = vsub.f32 %v519_v23, %v90_v47  ;;  %v88_v60 = vmul.f32 %v617_v62, %v49_v56  ;;  %v171_v16 = vadd.f32 %v170_v48, %v138_v34 }
  0x88   :  { %v160_v61 = vadd.f32 %v159_v52, %v129_v13  ;;  %v147_v17 = vmul.f32 %v681_v54, %v681_v54  ;;  %v148_v18 = vmul.f32 %v684_v55, %v684_v55  ;;  %v149_v33 = vmul.f32 %v687_v2, %v687_v2 }
  0x89   :  { %v706_v63 = vsub.f32 %v533_v28, %v88_v60  ;;  %v709_v22 = vsub.f32 %v539_v30, %v88_v60  ;;  %172 = vadd.xlane.f32.xlu1 %v171_v16  ;;  %v150_v23 = vmul.f32 %v690_v57, %v690_v57  ;;  %v714_v8 = vsub.f32 %v526_v26, %v90_v47 }
  0x8a   :  { %v161_v10 = vadd.f32 %v160_v61, %v130_v50  ;;  %v184_v14 = vadd.f32 %v148_v18, %v147_v17  ;;  %v717_v21 = vsub.f32 %v558_v36, %v90_v47  ;;  %v139_v5 = vmul.f32 %v693_v58, %v693_v58 }
  0x8b   :  { %v140_v28 = vmul.f32 %v696_v59, %v696_v59  ;;  %v141_v30 = vmul.f32 %v714_v8, %v714_v8  ;;  %v726_v7 = vsub.f32 %v544_v31, %v88_v60  ;;  %v144_v26 = vmul.f32 %v652_v32, %v652_v32 }
  0x8c   :  { %162 = vadd.xlane.f32.xlu2 %v161_v10  ;;  %v79_v0 = vpop.xlane.xlu1 %78  ;;  %v185_v12 = vadd.f32 %v184_v14, %v149_v33  ;;  %v731_v36 = vsub.f32 %v575_v41, %v88_v60  ;;  %v131_v34 = vmul.f32 %v706_v63, %v706_v63  ;;  %v132_v35 = vmul.f32 %v709_v22, %v709_v22 }
  0x8d   :  { %v142_v39 = vmul.f32 %v717_v21, %v717_v21  ;;  %v174_v31 = vadd.f32 %v140_v28, %v139_v5  ;;  %v94_v40 = vmul.f32 %v617_v62, %v79_v0  ;;  %v133_v13 = vmul.f32 %v726_v7, %v726_v7 }
  0x8e   :  { %v74_v1 = vpop.xlane.xlu0 %73  ;;  %v186_v44 = vadd.f32 %v185_v12, %v150_v23  ;;  %v164_v47 = vadd.f32 %v132_v35, %v131_v34  ;;  %v745_v50 = vsub.f32 %v455_v6, %v620_v3  ;;  %v134_v52 = vmul.f32 %v731_v36, %v731_v36 }
  0x8f   :  { %v93_v41 = vmul.f32 %v617_v62, %v74_v1  ;;  %v175_v48 = vadd.f32 %v174_v31, %v141_v30  ;;  %v145_v60 = vmul.f32 %v673_v20, %v673_v20  ;;  %v179_v16 = vadd.f32 %v144_v26, %v143_v45 }
  0x90   :  { %v165_v56 = vadd.f32 %v164_v47, %v133_v13  ;;  %v761_v6 = vsub.f32 %v563_v37, %v94_v40  ;;  %v764_v3 = vsub.f32 %v568_v38, %v94_v40  ;;  %v146_v37 = vmul.f32 %v745_v50, %v745_v50 }
  0x91   :  { %v752_v61 = vsub.f32 %v580_v42, %v93_v41  ;;  %v755_v17 = vsub.f32 %v585_v43, %v93_v41  ;;  %187 = vadd.xlane.f32.xlu1 %v186_v44  ;;  %v176_v18 = vadd.f32 %v175_v48, %v142_v39  ;;  %v758_v33 = vsub.f32 %v601_v49, %v93_v41 }
  0x92   :  { %v166_v23 = vadd.f32 %v165_v56, %v134_v52  ;;  %v767_v45 = vsub.f32 %v613_v53, %v93_v41  ;;  %v180_v53 = vadd.f32 %v179_v16, %v145_v60  ;;  %v780_v14 = vsub.f32 %v593_v46, %v94_v40 }
  0x93   :  { %v151_v42 = vmul.f32 %v752_v61, %v752_v61  ;;  %v152_v43 = vmul.f32 %v755_v17, %v755_v17  ;;  %v153_v49 = vmul.f32 %v758_v33, %v758_v33  ;;  %v155_v5 = vmul.f32 %v761_v6, %v761_v6 }
  0x94   :  { %177 = vadd.xlane.f32.xlu2 %v176_v18  ;;  %167 = vadd.xlane.f32.xlu0 %v166_v23  ;;  %v154_v38 = vmul.f32 %v767_v45, %v767_v45  ;;  %v156_v28 = vmul.f32 %v764_v3, %v764_v3  ;;  %v181_v0 = vadd.f32 %v180_v53, %v146_v37 }
  0x95   :  { %v189_v10 = vadd.f32 %v152_v43, %v151_v42  ;;  %v787_v12 = vsub.f32 %v607_v51, %v94_v40  ;;  %v157_v34 = vmul.f32 %v780_v14, %v780_v14 }
  0x96   :  { %v194_v35 = vadd.f32 %v156_v28, %v155_v5 }
  0x97   :  { %v190_v30 = vadd.f32 %v189_v10, %v153_v49  ;;  %v158_v46 = vmul.f32 %v787_v12, %v787_v12 }
  0x98   :  { %v195_v39 = vadd.f32 %v194_v35, %v157_v34 }
  0x99   :  { %v191_v26 = vadd.f32 %v190_v30, %v154_v38 }
  0x9a   :  { %v196_v31 = vadd.f32 %v195_v39, %v158_v46 }
  0x9c   :  { %182 = vadd.xlane.f32.xlu0 %v181_v0  ;;  %192 = vadd.xlane.f32.xlu2 %v191_v26 }
  0xa4   :  { %197 = vadd.xlane.f32.xlu0 %v196_v31 }
  0xfc   :  { %v173_v1 = vpop.xlane.xlu1 %172 }
  0xfd   :  { %v201_v44 = vmul.f32 %v173_v1, %v617_v62 }
  0xff   :  { %v209_v13 = vadd.f32 1e-05, %v201_v44  ;;  %v163_v47 = vpop.xlane.xlu2 %162 }
 0x100   :  { %v199_v51 = vmul.f32 %v163_v47, %v617_v62 }
 0x101   :  { %398 = vrsqrt.f32 %v209_v13  ;;  %vm241_vm2 = vweird.f32 %v209_v13 }
 0x102   :  { %v207_v40 = vadd.f32 1e-05, %v199_v51 }
 0x104   :  { %400 = vrsqrt.f32 %v207_v40  ;;  %v188_v41 = vpop.xlane.xlu1 %187  ;;  %vm221_vm4 = vweird.f32 %v207_v40 }
 0x105   :  { %v204_v48 = vmul.f32 %v188_v41, %v617_v62 }
 0x107   :  { %v399_v52 = vpop.eup %398  ;;  %v796_v56 = vadd.f32 1e-05, %v204_v48  ;;  %v178_v60 = vpop.xlane.xlu2 %177 }
 0x108   :  { %v168_v16 = vpop.xlane.xlu0 %167  ;;  %v236_v18 = vmul.f32 %v399_v52, %v209_v13  ;;  %v202_v23 = vmul.f32 %v178_v60, %v617_v62  ;;  %vm242_vm1 = vweird.f32 %v399_v52 }
 0x109   :  { %v200_v42 = vmul.f32 %v168_v16, %v617_v62  ;;  %402 = vrsqrt.f32 %v796_v56  ;;  %vm243_vm3 = vmor %vm241_vm2, %vm242_vm1  ;;  %vm271_vm6 = vweird.f32 %v796_v56 }
 0x10a   :  { %v401_v43 = vpop.eup %400  ;;  %v237_v49 = vmul.f32 %v399_v52, %v236_v18  ;;  %v801_v37 = vadd.f32 1e-05, %v202_v23 }
 0x10b   :  { %v803_v38 = vadd.f32 1e-05, %v200_v42  ;;  %v216_v10 = vmul.f32 %v401_v43, %v207_v40  ;;  %vm222_vm5 = vweird.f32 %v401_v43 }
 0x10c   :  { %v238_v53 = vmul.f32 0.5, %v237_v49  ;;  %404 = vrsqrt.f32 %v801_v37  ;;  %vm251_vm8 = vweird.f32 %v801_v37  ;;  %vm223_vm9 = vmor %vm221_vm4, %vm222_vm5 }
 0x10d   :  { %v217_v5 = vmul.f32 %v401_v43, %v216_v10  ;;  %406 = vrsqrt.f32 %v803_v38  ;;  %vm231_vm10 = vweird.f32 %v803_v38 }
 0x10e   :  { %v239_v28 = vsub.f32 1.5, %v238_v53 }
 0x10f   :  { %v403_v30 = vpop.eup %402  ;;  %v218_v26 = vmul.f32 0.5, %v217_v5  ;;  %v193_v0 = vpop.xlane.xlu2 %192 }
 0x110   :  { %v183_v34 = vpop.xlane.xlu0 %182  ;;  %v240_v35 = vmul.f32 %v399_v52, %v239_v28  ;;  %v266_v46 = vmul.f32 %v403_v30, %v796_v56  ;;  %v205_v39 = vmul.f32 %v193_v0, %v617_v62  ;;  %vm272_vm7 = vweird.f32 %v403_v30 }
 0x111   :  { %v219_v31 = vsub.f32 1.5, %v218_v26  ;;  %v811_v51 = vmul.f32 %v183_v34, %v617_v62  ;;  %vm273_vm11 = vmor %vm271_vm6, %vm272_vm7 }
 0x112   :  { %v405_v1 = vpop.eup %404  ;;  %v244_v44 = vsel %vm243_vm3, %v399_v52, %v240_v35  ;;  %v267_v47 = vmul.f32 %v403_v30, %v266_v46  ;;  %v821_v52 = vadd.f32 1e-05, %v205_v39 }
 0x113   :  { %v813_v41 = vpop.eup %406  ;;  %v303_v13 = vmul.f32 %v244_v44, %v624_v15  ;;  %v304_v48 = vmul.f32 %v244_v44, %v627_v19  ;;  %v305_v60 = vmul.f32 %v244_v44, %v631_v24  ;;  %v306_v16 = vmul.f32 %v244_v44, %v638_v27 }
 0x114   :  { %v220_v18 = vmul.f32 %v401_v43, %v219_v31  ;;  %v268_v23 = vmul.f32 0.5, %v267_v47  ;;  %v246_v42 = vmul.f32 %v405_v1, %v801_v37  ;;  %v226_v27 = vmul.f32 %v813_v41, %v803_v38 }
 0x115   :  { %v335_v49 = vmax.f32 %v303_v13, 0.0  ;;  %v336_v10 = vmax.f32 %v304_v48, 0.0  ;;  %v337_v53 = vmax.f32 %v305_v60, 0.0  ;;  %v338_v5 = vmax.f32 %v306_v16, 0.0 }
 0x116   :  { %v224_v15 = vsel %vm223_vm9, %v401_v43, %v220_v18  ;;  %v269_v19 = vsub.f32 1.5, %v268_v23  ;;  %v247_v24 = vmul.f32 %v405_v1, %v246_v42  ;;  %vm252_vm12 = vweird.f32 %v405_v1 }
 0x117   :  { %v363_v28 = vpack.c.bf16 %v336_v10, %v335_v49  ;;  %v364_v26 = vpack.c.bf16 %v338_v5, %v337_v53  ;;  %v295_v0 = vmul.f32 %v224_v15, %v641_v29  ;;  %v296_v34 = vmul.f32 %v224_v15, %v644_v4  ;;  %vm253_vm13 = vmor %vm251_vm8, %vm252_vm12 }
 0x118   :  { %v297_v35 = vmul.f32 %v224_v15, %v657_v11  ;;  %v298_v46 = vmul.f32 %v224_v15, %v660_v9  ;;  %v270_v39 = vmul.f32 %v403_v30, %v269_v19  ;;  %v248_v31 = vmul.f32 0.5, %v247_v24 }
 0x119   :  { %379 = vst [vmem:[%s922_s1 + $0x20] sm:$0xff] %v363_v28  ;;  %v327_v40 = vmax.f32 %v295_v0, 0.0  ;;  %v328_v43 = vmax.f32 %v296_v34, 0.0  ;;  %v227_v29 = vmul.f32 %v813_v41, %v226_v27  ;;  %408 = vrsqrt.f32 %v821_v52 }
 0x11a   :  { %380 = vst [vmem:[%s922_s1 + $0x28] sm:$0xff] %v364_v26  ;;  %v329_v4 = vmax.f32 %v297_v35, 0.0  ;;  %v330_v11 = vmax.f32 %v298_v46, 0.0  ;;  %v274_v9 = vsel %vm273_vm11, %v403_v30, %v270_v39  ;;  %v249_v44 = vsub.f32 1.5, %v248_v31 }
 0x11b   :  { %v359_v47 = vpack.c.bf16 %v328_v43, %v327_v40  ;;  %v315_v13 = vmul.f32 %v274_v9, %v681_v54  ;;  %v316_v48 = vmul.f32 %v274_v9, %v684_v55  ;;  %v317_v60 = vmul.f32 %v274_v9, %v687_v2 }
 0x11c   :  { %v360_v56 = vpack.c.bf16 %v330_v11, %v329_v4  ;;  %v318_v16 = vmul.f32 %v274_v9, %v690_v57  ;;  %v250_v18 = vmul.f32 %v405_v1, %v249_v44  ;;  %v228_v23 = vmul.f32 0.5, %v227_v29  ;;  %v198_v57 = vpop.xlane.xlu0 %197 }
 0x11d   :  { %375 = vst [vmem:[%s922_s1] sm:$0xff] %v359_v47  ;;  %v347_v42 = vmax.f32 %v315_v13, 0.0  ;;  %v348_v49 = vmax.f32 %v316_v48, 0.0  ;;  %v349_v30 = vmax.f32 %v317_v60, 0.0  ;;  %vm232_vm14 = vweird.f32 %v813_v41 }
 0x11e   :  { %376 = vst [vmem:[%s922_s1 + $0x8] sm:$0xff] %v360_v56  ;;  %v350_v54 = vmax.f32 %v318_v16, 0.0  ;;  %v254_v55 = vsel %vm253_vm13, %v405_v1, %v250_v18  ;;  %v229_v2 = vsub.f32 1.5, %v228_v23  ;;  %v211_v27 = vadd.f32 1e-05, %v811_v51  ;;  %vm233_vm15 = vmor %vm231_vm10, %vm232_vm14 }
 0x11f   :  { %v369_v10 = vpack.c.bf16 %v348_v49, %v347_v42  ;;  %v307_v53 = vmul.f32 %v254_v55, %v693_v58  ;;  %v308_v5 = vmul.f32 %v254_v55, %v696_v59  ;;  %v309_v37 = vmul.f32 %v254_v55, %v714_v8 }
 0x120   :  { %v370_v15 = vpack.c.bf16 %v350_v54, %v349_v30  ;;  %v310_v19 = vmul.f32 %v254_v55, %v717_v21  ;;  %v230_v24 = vmul.f32 %v813_v41, %v229_v2  ;;  %v206_v58 = vmul.f32 %v198_v57, %v617_v62  ;;  %v409_v21 = vpop.eup %408 }
 0x121   :  { %385 = vst [vmem:[%s922_s1 + $0x50] sm:$0xff] %v369_v10  ;;  %v339_v1 = vmax.f32 %v307_v53, 0.0  ;;  %v340_v28 = vmax.f32 %v308_v5, 0.0  ;;  %v341_v26 = vmax.f32 %v309_v37, 0.0  ;;  %410 = vrsqrt.f32 %v211_v27 }
 0x122   :  { %386 = vst [vmem:[%s922_s1 + $0x58] sm:$0xff] %v370_v15  ;;  %v342_v59 = vmax.f32 %v310_v19, 0.0  ;;  %v234_v8 = vsel %vm233_vm15, %v813_v41, %v230_v24  ;;  %v276_v62 = vmul.f32 %v409_v21, %v821_v52  ;;  %v214_v40 = vadd.f32 1e-05, %v206_v58 }
 0x123   :  { %v365_v51 = vpack.c.bf16 %v340_v28, %v339_v1  ;;  %v299_v0 = vmul.f32 %v234_v8, %v706_v63  ;;  %v300_v34 = vmul.f32 %v234_v8, %v709_v22  ;;  %v301_v35 = vmul.f32 %v234_v8, %v726_v7 }
 0x124   :  { %v366_v38 = vpack.c.bf16 %v342_v59, %v341_v26  ;;  %v302_v46 = vmul.f32 %v234_v8, %v731_v36  ;;  %v277_v22 = vmul.f32 %v409_v21, %v276_v62  ;;  %412 = vrsqrt.f32 %v214_v40 }
 0x125   :  { %381 = vst [vmem:[%s922_s1 + $0x30] sm:$0xff] %v365_v51  ;;  %v331_v39 = vmax.f32 %v299_v0, 0.0  ;;  %v332_v41 = vmax.f32 %v300_v34, 0.0  ;;  %v333_v31 = vmax.f32 %v301_v35, 0.0  ;;  %vm282_vm0 = vweird.f32 %v409_v21 }
 0x126   :  { %382 = vst [vmem:[%s922_s1 + $0x38] sm:$0xff] %v366_v38  ;;  %v334_v63 = vmax.f32 %v302_v46, 0.0  ;;  %v278_v29 = vmul.f32 0.5, %v277_v22  ;;  %vm281_vm1 = vweird.f32 %v821_v52  ;;  %vm261_vm4 = vweird.f32 %v211_v27 }
 0x127   :  { %v361_v7 = vpack.c.bf16 %v332_v41, %v331_v39  ;;  %v411_v43 = vpop.eup %410  ;;  %vm283_vm2 = vmor %vm281_vm1, %vm282_vm0  ;;  %vm291_vm7 = vweird.f32 %v214_v40 }
 0x128   :  { %v362_v36 = vpack.c.bf16 %v334_v63, %v333_v31  ;;  %v256_v4 = vmul.f32 %v411_v43, %v211_v27  ;;  %v279_v11 = vsub.f32 1.5, %v278_v29  ;;  %vm262_vm3 = vweird.f32 %v411_v43 }
 0x129   :  { %377 = vst [vmem:[%s922_s1 + $0x10] sm:$0xff] %v361_v7  ;;  %vm263_vm5 = vmor %vm261_vm4, %vm262_vm3 }
 0x12a   :  { %378 = vst [vmem:[%s922_s1 + $0x18] sm:$0xff] %v362_v36  ;;  %v257_v9 = vmul.f32 %v411_v43, %v256_v4  ;;  %v280_v44 = vmul.f32 %v409_v21, %v279_v11  ;;  %v413_v47 = vpop.eup %412 }
 0x12b   :  { %v286_v60 = vmul.f32 %v413_v47, %v214_v40  ;;  %vm292_vm6 = vweird.f32 %v413_v47 }
 0x12c   :  { %v258_v13 = vmul.f32 0.5, %v257_v9  ;;  %v284_v48 = vsel %vm283_vm2, %v409_v21, %v280_v44  ;;  %vm293_vm8 = vmor %vm291_vm7, %vm292_vm6 }
 0x12d   :  { %v319_v56 = vmul.f32 %v284_v48, %v752_v61  ;;  %v320_v16 = vmul.f32 %v284_v48, %v755_v17  ;;  %v321_v18 = vmul.f32 %v284_v48, %v758_v33  ;;  %v322_v23 = vmul.f32 %v284_v48, %v767_v45 }
 0x12e   :  { %v259_v42 = vsub.f32 1.5, %v258_v13  ;;  %v287_v49 = vmul.f32 %v413_v47, %v286_v60 }
 0x12f   :  { %v351_v30 = vmax.f32 %v319_v56, 0.0  ;;  %v352_v54 = vmax.f32 %v320_v16, 0.0  ;;  %v353_v55 = vmax.f32 %v321_v18, 0.0  ;;  %v354_v52 = vmax.f32 %v322_v23, 0.0 }
 0x130   :  { %v260_v2 = vmul.f32 %v411_v43, %v259_v42  ;;  %v288_v57 = vmul.f32 0.5, %v287_v49 }
 0x131   :  { %v371_v10 = vpack.c.bf16 %v352_v54, %v351_v30  ;;  %v372_v53 = vpack.c.bf16 %v354_v52, %v353_v55 }
 0x132   :  { %v264_v61 = vsel %vm263_vm5, %v411_v43, %v260_v2  ;;  %v289_v5 = vsub.f32 1.5, %v288_v57 }
 0x133   :  { %387 = vst [vmem:[%s922_s1 + $0x60] sm:$0xff] %v371_v10  ;;  %v311_v17 = vmul.f32 %v264_v61, %v635_v25  ;;  %v312_v33 = vmul.f32 %v264_v61, %v652_v32  ;;  %v313_v45 = vmul.f32 %v264_v61, %v673_v20  ;;  %v314_v37 = vmul.f32 %v264_v61, %v745_v50 }
 0x134   :  { %388 = vst [vmem:[%s922_s1 + $0x68] sm:$0xff] %v372_v53  ;;  %v290_v15 = vmul.f32 %v413_v47, %v289_v5 }
 0x135   :  { %v343_v19 = vmax.f32 %v311_v17, 0.0  ;;  %v344_v24 = vmax.f32 %v312_v33, 0.0  ;;  %v345_v27 = vmax.f32 %v313_v45, 0.0  ;;  %v346_v1 = vmax.f32 %v314_v37, 0.0 }
 0x136   :  { %v294_v28 = vsel %vm293_vm8, %v413_v47, %v290_v15 }
 0x137   :  { %v367_v26 = vpack.c.bf16 %v344_v24, %v343_v19  ;;  %v368_v25 = vpack.c.bf16 %v346_v1, %v345_v27  ;;  %v323_v32 = vmul.f32 %v294_v28, %v761_v6  ;;  %v324_v20 = vmul.f32 %v294_v28, %v764_v3 }
 0x138   :  { %v325_v50 = vmul.f32 %v294_v28, %v780_v14  ;;  %v326_v58 = vmul.f32 %v294_v28, %v787_v12 }
 0x139   :  { %383 = vst [vmem:[%s922_s1 + $0x40] sm:$0xff] %v367_v26  ;;  %v355_v59 = vmax.f32 %v323_v32, 0.0  ;;  %v356_v8 = vmax.f32 %v324_v20, 0.0 }
 0x13a   :  { %384 = vst [vmem:[%s922_s1 + $0x48] sm:$0xff] %v368_v25  ;;  %v357_v21 = vmax.f32 %v325_v50, 0.0  ;;  %v358_v51 = vmax.f32 %v326_v58, 0.0 }
 0x13b   :  { %v373_v0 = vpack.c.bf16 %v356_v8, %v355_v59 }
 0x13c   :  { %v374_v6 = vpack.c.bf16 %v358_v51, %v357_v21 }
 0x13d   :  { %389 = vst [vmem:[%s922_s1 + $0x70] sm:$0xff] %v373_v0 }
 0x13e   :  { %390 = vst [vmem:[%s922_s1 + $0x78] sm:$0xff] %v374_v6 }

// kernel: resnet_encoder_forward.7
= control target key start
LH: loop header
LB: loop body
LE: loop exit
PB: predicated region body
PF: predicated region fallthrough
CT: control target
= control target key end

     0   :  { %s1568_s3 = inlined_call_operand.vmem [shape: bf16[128,128], index: 3, kind: input, shape index: {}]   ;;  %s1569_s1 = inlined_call_operand.vmem [shape: bf16[896,128], index: 1, kind: input, shape index: {}]   ;;  %s1570_s0 = inlined_call_operand.vmem [shape: bf16[32,896], index: 0, kind: input, shape index: {}]   ;;  %s1571_s2 = inlined_call_operand.vmem [shape: bf16[32,128], index: 2, kind: input, shape index: {}]   ;;  %s1572_s4 = inlined_call_operand.vmem [shape: f32[32,1], index: 4, kind: input, shape index: {}]   ;;  %s1573_s5 = inlined_call_operand.vmem [shape: f32[32,128], index: 5, kind: output, shape index: {}]  }
   0x1   :  { %v1227_v0 = vld [vmem:[%s1568_s3 + $0x38] sm:$0xff]  ;;  %v1226_v4 = vld [vmem:[%s1568_s3 + $0x30] sm:$0xff]  ;;  %v1225_v8 = vld [vmem:[%s1568_s3 + $0x28] sm:$0xff] }
   0x2   :  { %v1169_v1 = vld [vmem:[%s1569_s1 + $0x38] sm:$0xff]  ;;  %228 = vmatpush.bf16.msra.mxu0 %v1227_v0  ;;  %v1168_v5 = vld [vmem:[%s1569_s1 + $0x30] sm:$0xff]  ;;  %v1167_v9 = vld [vmem:[%s1569_s1 + $0x28] sm:$0xff] }
   0x3   :  { %v1177_v2 = vld [vmem:[%s1569_s1 + $0x78] sm:$0xff]  ;;  %655 = vmatpush.bf16.msra.mxu1 %v1169_v1  ;;  %v1176_v6 = vld [vmem:[%s1569_s1 + $0x70] sm:$0xff]  ;;  %v1175_v10 = vld [vmem:[%s1569_s1 + $0x68] sm:$0xff] }
   0x4   :  { %v1185_v3 = vld [vmem:[%s1569_s1 + $0xb8] sm:$0xff]  ;;  %674 = vmatpush.bf16.msra.mxu2 %v1177_v2  ;;  %v1184_v7 = vld [vmem:[%s1569_s1 + $0xb0] sm:$0xff]  ;;  %v1183_v11 = vld [vmem:[%s1569_s1 + $0xa8] sm:$0xff] }
   0x5   :  { %693 = vmatpush.bf16.msra.mxu3 %v1185_v3  ;;  %v1224_v12 = vld [vmem:[%s1568_s3 + $0x20] sm:$0xff]  ;;  %v1223_v16 = vld [vmem:[%s1568_s3 + $0x18] sm:$0xff]  ;;  %v1222_v20 = vld [vmem:[%s1568_s3 + $0x10] sm:$0xff] }
   0x6   :  { %229 = vmatpush.bf16.msra.mxu0 %v1226_v4  ;;  %v1166_v13 = vld [vmem:[%s1569_s1 + $0x20] sm:$0xff]  ;;  %v1165_v17 = vld [vmem:[%s1569_s1 + $0x18] sm:$0xff]  ;;  %v1164_v21 = vld [vmem:[%s1569_s1 + $0x10] sm:$0xff] }
   0x7   :  { %656 = vmatpush.bf16.msra.mxu1 %v1168_v5  ;;  %v1174_v14 = vld [vmem:[%s1569_s1 + $0x60] sm:$0xff]  ;;  %v1173_v18 = vld [vmem:[%s1569_s1 + $0x58] sm:$0xff]  ;;  %v1172_v22 = vld [vmem:[%s1569_s1 + $0x50] sm:$0xff] }
   0x8   :  { %675 = vmatpush.bf16.msra.mxu2 %v1176_v6  ;;  %v1182_v15 = vld [vmem:[%s1569_s1 + $0xa0] sm:$0xff]  ;;  %v1181_v19 = vld [vmem:[%s1569_s1 + $0x98] sm:$0xff]  ;;  %v1180_v23 = vld [vmem:[%s1569_s1 + $0x90] sm:$0xff] }
   0x9   :  { %694 = vmatpush.bf16.msra.mxu3 %v1184_v7  ;;  %v1221_v24 = vld [vmem:[%s1568_s3 + $0x8] sm:$0xff]  ;;  %v1220_v28 = vld [vmem:[%s1568_s3] sm:$0xff]  ;;  %v1151_v33 = vld [vmem:[%s1570_s0 + $0x18] sm:$0xf0] }
   0xa   :  { %230 = vmatpush.bf16.msra.mxu0 %v1225_v8  ;;  %v1163_v25 = vld [vmem:[%s1569_s1 + $0x8] sm:$0xff]  ;;  %v1162_v29 = vld [vmem:[%s1569_s1] sm:$0xff]  ;;  %v1209_v38 = vld [vmem:[%s1569_s1 + $0x178] sm:$0xff] }
   0xb   :  { %657 = vmatpush.bf16.msra.mxu1 %v1167_v9  ;;  %v1171_v26 = vld [vmem:[%s1569_s1 + $0x48] sm:$0xff]  ;;  %v1170_v30 = vld [vmem:[%s1569_s1 + $0x40] sm:$0xff]  ;;  %v1193_v39 = vld [vmem:[%s1569_s1 + $0xf8] sm:$0xff] }
   0xc   :  { %676 = vmatpush.bf16.msra.mxu2 %v1175_v10  ;;  %v1179_v27 = vld [vmem:[%s1569_s1 + $0x88] sm:$0xff]  ;;  %v1178_v31 = vld [vmem:[%s1569_s1 + $0x80] sm:$0xff]  ;;  %v1201_v44 = vld [vmem:[%s1569_s1 + $0x138] sm:$0xff] }
   0xd   :  { %695 = vmatpush.bf16.msra.mxu3 %v1183_v11  ;;  %v870_v32 = vld [vmem:[%s1570_s0] sm:$0xf]  ;;  %v1148_v34 = vld [vmem:[%s1570_s0 + $0x4] sm:$0xf]  ;;  %v878_v36 = vld [vmem:[%s1570_s0 + $0x8] sm:$0xf] }
   0xe   :  { %231 = vmatpush.bf16.msra.mxu0 %v1224_v12  ;;  %v872_v35 = vld [vmem:[%s1570_s0 + $0x1c] sm:$0xf0]  ;;  %v1152_v37 = vld [vmem:[%s1570_s0 + $0x20] sm:$0xf0]  ;;  %v871_v41 = vor.u32 %v1151_v33, %v870_v32  ;;  %v1217_v45 = vld [vmem:[%s1569_s1 + $0x1b8] sm:$0xff] }
   0xf   :  { %658 = vmatpush.bf16.msra.mxu1 %v1166_v13  ;;  %v1218_v40 = vld [vmem:[%s1571_s2] sm:$0xff]  ;;  %v875_v42 = vor.u32 %v1148_v34, %v872_v35  ;;  %v879_v43 = vor.u32 %v1152_v37, %v878_v36  ;;  %v1208_v46 = vld [vmem:[%s1569_s1 + $0x170] sm:$0xff]  ;;  %v1207_v50 = vld [vmem:[%s1569_s1 + $0x168] sm:$0xff] }
  0x10   :  { %677 = vmatpush.bf16.msra.mxu2 %v1174_v14  ;;  %v1192_v47 = vld [vmem:[%s1569_s1 + $0xf0] sm:$0xff]  ;;  %v1191_v51 = vld [vmem:[%s1569_s1 + $0xe8] sm:$0xff]  ;;  %v1206_v54 = vld [vmem:[%s1569_s1 + $0x160] sm:$0xff] }
  0x11   :  { %696 = vmatpush.bf16.msra.mxu3 %v1182_v15  ;;  %v1200_v48 = vld [vmem:[%s1569_s1 + $0x130] sm:$0xff]  ;;  %v1199_v52 = vld [vmem:[%s1569_s1 + $0x128] sm:$0xff]  ;;  %v1190_v55 = vld [vmem:[%s1569_s1 + $0xe0] sm:$0xff] }
  0x12   :  { %232 = vmatpush.bf16.msra.mxu0 %v1223_v16  ;;  %v1216_v49 = vld [vmem:[%s1569_s1 + $0x1b0] sm:$0xff]  ;;  %v1215_v53 = vld [vmem:[%s1569_s1 + $0x1a8] sm:$0xff]  ;;  %v1198_v56 = vld [vmem:[%s1569_s1 + $0x120] sm:$0xff]  ;;  %v1231_v16 = vmov 0  }
  0x13   :  { %659 = vmatpush.bf16.msra.mxu1 %v1165_v17  ;;  %v1214_v57 = vld [vmem:[%s1569_s1 + $0x1a0] sm:$0xff]  ;;  %v898_v58 = vld [vmem:[%s1570_s0 + $0x38] sm:$0xf]  ;;  %v1158_v59 = vld [vmem:[%s1570_s0 + $0x50] sm:$0xf0]  ;;  %1229 = vset.pattern.permute.xlu0 %v1231_v16 }
  0x14   :  { %678 = vmatpush.bf16.msra.mxu2 %v1173_v18  ;;  %v1155_v60 = vld [vmem:[%s1570_s0 + $0x3c] sm:$0xf]  ;;  %v900_v61 = vld [vmem:[%s1570_s0 + $0x54] sm:$0xf0]  ;;  %v906_v62 = vld [vmem:[%s1570_s0 + $0x40] sm:$0xf]  ;;  %v899_v3 = vor.u32 %v1158_v59, %v898_v58  ;;  %1230 = vset.pattern.permute.xlu1 %v1231_v16 }
  0x15   :  { %697 = vmatpush.bf16.msra.mxu3 %v1181_v19  ;;  %v1159_v63 = vld [vmem:[%s1570_s0 + $0x58] sm:$0xf0]  ;;  %v1219_v2 = vld [vmem:[%s1571_s2 + $0x8] sm:$0xff]  ;;  %v903_v4 = vor.u32 %v1155_v60, %v900_v61  ;;  %v1204_v8 = vld [vmem:[%s1569_s1 + $0x150] sm:$0xff] }
  0x16   :  { %233 = vmatpush.bf16.msra.mxu0 %v1222_v20  ;;  %v1205_v0 = vld [vmem:[%s1569_s1 + $0x158] sm:$0xff]  ;;  %v907_v5 = vor.u32 %v1159_v63, %v906_v62  ;;  %v1188_v9 = vld [vmem:[%s1569_s1 + $0xd0] sm:$0xff]  ;;  %v788_v12 = vld [vmem:[%s1572_s4] sm:$0xff] }
  0x17   :  { %660 = vmatpush.bf16.msra.mxu1 %v1164_v21  ;;  %v1189_v1 = vld [vmem:[%s1569_s1 + $0xd8] sm:$0xff]  ;;  %v1196_v10 = vld [vmem:[%s1569_s1 + $0x110] sm:$0xff]  ;;  %v1203_v14 = vld [vmem:[%s1569_s1 + $0x148] sm:$0xff]  ;;  %794 = vperm.xlu0 %1229, %v788_v12  }
  0x18   :  { %679 = vmatpush.bf16.msra.mxu2 %v1172_v22  ;;  %v1197_v6 = vld [vmem:[%s1569_s1 + $0x118] sm:$0xff]  ;;  %v1212_v11 = vld [vmem:[%s1569_s1 + $0x190] sm:$0xff]  ;;  %v1187_v15 = vld [vmem:[%s1569_s1 + $0xc8] sm:$0xff] }
  0x19   :  { %698 = vmatpush.bf16.msra.mxu3 %v1180_v23  ;;  %v1213_v7 = vld [vmem:[%s1569_s1 + $0x198] sm:$0xff]  ;;  %v790_v13 = vld [vmem:[%s1572_s4 + $0x10] sm:$0xff]  ;;  %v1195_v17 = vld [vmem:[%s1569_s1 + $0x108] sm:$0xff] }
  0x1a   :  { %234 = vmatpush.bf16.msra.mxu0 %v1221_v24  ;;  %804 = vperm.xlu1 %1230, %v790_v13   ;;  %v1211_v18 = vld [vmem:[%s1569_s1 + $0x188] sm:$0xff]  ;;  %v1202_v19 = vld [vmem:[%s1569_s1 + $0x140] sm:$0xff]  ;;  %v1154_v32 = vld [vmem:[%s1570_s0 + $0x30] sm:$0xf0] }
  0x1b   :  { %661 = vmatpush.bf16.msra.mxu1 %v1163_v25  ;;  %v1186_v20 = vld [vmem:[%s1569_s1 + $0xc0] sm:$0xff]  ;;  %v1149_v23 = vld [vmem:[%s1570_s0 + $0xc] sm:$0xf]  ;;  %v880_v24 = vld [vmem:[%s1570_s0 + $0x24] sm:$0xf0] }
  0x1c   :  { %680 = vmatpush.bf16.msra.mxu2 %v1171_v26  ;;  %v1194_v21 = vld [vmem:[%s1569_s1 + $0x100] sm:$0xff]  ;;  %v886_v25 = vld [vmem:[%s1570_s0 + $0x10] sm:$0xf]  ;;  %v1153_v26 = vld [vmem:[%s1570_s0 + $0x28] sm:$0xf0]  ;;  %v883_v33 = vor.u32 %v1149_v23, %v880_v24 }
  0x1d   :  { %699 = vmatpush.bf16.msra.mxu3 %v1179_v27  ;;  %v1210_v22 = vld [vmem:[%s1569_s1 + $0x180] sm:$0xff]  ;;  %v1150_v27 = vld [vmem:[%s1570_s0 + $0x14] sm:$0xf]  ;;  %v887_v34 = vor.u32 %v1153_v26, %v886_v25 }
  0x1e   :  { %235 = vmatpush.bf16.msra.mxu0 %v1220_v28  ;;  %v888_v28 = vld [vmem:[%s1570_s0 + $0x2c] sm:$0xf0]  ;;  %v1156_v37 = vld [vmem:[%s1570_s0 + $0x44] sm:$0xf] }
  0x1f   :  { %662 = vmatpush.bf16.msra.mxu1 %v1162_v29  ;;  %v789_v29 = vld [vmem:[%s1572_s4 + $0x8] sm:$0xff]  ;;  %v891_v35 = vor.u32 %v1150_v27, %v888_v28 }
  0x20   :  { %681 = vmatpush.bf16.msra.mxu2 %v1170_v30  ;;  %v791_v30 = vld [vmem:[%s1572_s4 + $0x18] sm:$0xff]  ;;  %799 = vperm.xlu0 %1229, %v789_v29  }
  0x21   :  { %700 = vmatpush.bf16.msra.mxu3 %v1178_v31  ;;  %236 = vmatmul.bf16.vlgmr.msra.gmra.mxu0 %v1218_v40  ;;  %v894_v31 = vld [vmem:[%s1570_s0 + $0x18] sm:$0xf]  ;;  %v1160_v40 = vld [vmem:[%s1570_s0 + $0x60] sm:$0xf0] }
  0x22   :  { %712 = vmatpush.bf16.msrb.mxu0 %v1193_v39  ;;  %663 = vmatmul.bf16.vlgmr.msra.gmra.mxu1 %v871_v41  ;;  %v895_v36 = vor.u32 %v1154_v32, %v894_v31  ;;  %v914_v39 = vld [vmem:[%s1570_s0 + $0x48] sm:$0xf]  ;;  %v1157_v41 = vld [vmem:[%s1570_s0 + $0x4c] sm:$0xf] }
  0x23   :  { %682 = vmatmul.bf16.vlgmr.msra.gmra.mxu2 %v875_v42  ;;  %731 = vmatpush.bf16.msrb.mxu1 %v1201_v44  ;;  %v916_v42 = vld [vmem:[%s1570_s0 + $0x64] sm:$0xf0]  ;;  %v1161_v44 = vld [vmem:[%s1570_s0 + $0x68] sm:$0xf0] }
  0x24   :  { %750 = vmatpush.bf16.msrb.mxu2 %v1209_v38  ;;  %701 = vmatmul.bf16.vlgmr.msra.gmra.mxu3 %v879_v43  ;;  %v908_v38 = vld [vmem:[%s1570_s0 + $0x5c] sm:$0xf0]  ;;  %v922_v43 = vld [vmem:[%s1570_s0 + $0x50] sm:$0xf] }
  0x25   :  { %769 = vmatpush.bf16.msrb.mxu3 %v1217_v45  ;;  %809 = vperm.xlu1 %1230, %v791_v30   ;;  %v911_v45 = vor.u32 %v1156_v37, %v908_v38 }
  0x26   :  { %713 = vmatpush.bf16.msrb.mxu0 %v1192_v47  ;;  %v919_v47 = vor.u32 %v1157_v41, %v916_v42 }
  0x27   :  { %732 = vmatpush.bf16.msrb.mxu1 %v1200_v48  ;;  %v923_v48 = vor.u32 %v1161_v44, %v922_v43 }
  0x28   :  { %751 = vmatpush.bf16.msrb.mxu2 %v1208_v46  ;;  %v915_v46 = vor.u32 %v1160_v40, %v914_v39 }
  0x29   :  { %770 = vmatpush.bf16.msrb.mxu3 %v1216_v49 }
  0x2a   :  { %714 = vmatpush.bf16.msrb.mxu0 %v1191_v51 }
  0x2b   :  { %733 = vmatpush.bf16.msrb.mxu1 %v1199_v52 }
  0x2c   :  { %752 = vmatpush.bf16.msrb.mxu2 %v1207_v50 }
  0x2d   :  { %771 = vmatpush.bf16.msrb.mxu3 %v1215_v53 }
  0x2e   :  { %715 = vmatpush.bf16.msrb.mxu0 %v1190_v55 }
  0x2f   :  { %734 = vmatpush.bf16.msrb.mxu1 %v1198_v56 }
  0x30   :  { %753 = vmatpush.bf16.msrb.mxu2 %v1206_v54 }
  0x31   :  { %772 = vmatpush.bf16.msrb.mxu3 %v1214_v57  ;;  %241 = vmatmul.bf16.gmra.mxu0 %v1219_v2 }
  0x32   :  { %716 = vmatpush.bf16.msrb.mxu0 %v1189_v1  ;;  %668 = vmatmul.bf16.gmra.mxu1 %v899_v3 }
  0x33   :  { %687 = vmatmul.bf16.gmra.mxu2 %v903_v4  ;;  %735 = vmatpush.bf16.msrb.mxu1 %v1197_v6 }
  0x34   :  { %754 = vmatpush.bf16.msrb.mxu2 %v1205_v0  ;;  %706 = vmatmul.bf16.gmra.mxu3 %v907_v5 }
  0x35   :  { %773 = vmatpush.bf16.msrb.mxu3 %v1213_v7 }
  0x36   :  { %717 = vmatpush.bf16.msrb.mxu0 %v1188_v9 }
  0x37   :  { %736 = vmatpush.bf16.msrb.mxu1 %v1196_v10 }
  0x38   :  { %755 = vmatpush.bf16.msrb.mxu2 %v1204_v8 }
  0x39   :  { %774 = vmatpush.bf16.msrb.mxu3 %v1212_v11 }
  0x3a   :  { %718 = vmatpush.bf16.msrb.mxu0 %v1187_v15 }
  0x3b   :  { %737 = vmatpush.bf16.msrb.mxu1 %v1195_v17 }
  0x3c   :  { %756 = vmatpush.bf16.msrb.mxu2 %v1203_v14 }
  0x3d   :  { %775 = vmatpush.bf16.msrb.mxu3 %v1211_v18 }
  0x3e   :  { %719 = vmatpush.bf16.msrb.mxu0 %v1186_v20 }
  0x3f   :  { %738 = vmatpush.bf16.msrb.mxu1 %v1194_v21 }
  0x40   :  { %757 = vmatpush.bf16.msrb.mxu2 %v1202_v19 }
  0x41   :  { %776 = vmatpush.bf16.msrb.mxu3 %v1210_v22  ;;  %720 = vmatmul.bf16.vlgmr.msrb.gmra.mxu0 %v883_v33 }
  0x42   :  { %739 = vmatmul.bf16.vlgmr.msrb.gmra.mxu1 %v887_v34 }
  0x43   :  { %758 = vmatmul.bf16.vlgmr.msrb.gmra.mxu2 %v891_v35 }
  0x44   :  { %777 = vmatmul.bf16.vlgmr.msrb.gmra.mxu3 %v895_v36 }
  0x51   :  { %725 = vmatmul.bf16.gmra.mxu0 %v911_v45 }
  0x52   :  { %744 = vmatmul.bf16.gmra.mxu1 %v915_v46 }
  0x53   :  { %763 = vmatmul.bf16.gmra.mxu2 %v919_v47 }
  0x54   :  { %782 = vmatmul.bf16.gmra.mxu3 %v923_v48 }
  0x89   :  { %v795_v11 = vpop.permute.xlu0 %794 }
  0x8c   :  { %v805_v43 = vpop.permute.xlu1 %804 }
  0x92   :  { %v800_v29 = vpop.permute.xlu0 %799 }
  0x9e   :  { %v237_v49 = vpop.f32.mrf.mxu0 }
  0x9f   :  { %v664_v50 = vpop.f32.mrf.mxu1 }
  0xa0   :  { %v665_v63 = vadd.f32 %v664_v50, %v237_v49 }
  0xa6   :  { %v683_v51 = vpop.f32.mrf.mxu2  ;;  %v239_v53 = vpop.f32.mrf.mxu0 }
  0xa7   :  { %v702_v52 = vpop.f32.mrf.mxu3  ;;  %v666_v54 = vpop.f32.mrf.mxu1  ;;  %v684_v0 = vadd.f32 %v683_v51, %v665_v63 }
  0xa8   :  { %v667_v6 = vadd.f32 %v666_v54, %v239_v53  ;;  %v810_v54 = vpop.permute.xlu1 %809 }
  0xa9   :  { %v703_v3 = vadd.f32 %v702_v52, %v684_v0 }
  0xae   :  { %v685_v55 = vpop.f32.mrf.mxu2  ;;  %v242_v57 = vpop.f32.mrf.mxu0 }
  0xaf   :  { %v704_v56 = vpop.f32.mrf.mxu3  ;;  %v669_v58 = vpop.f32.mrf.mxu1  ;;  %v686_v8 = vadd.f32 %v685_v55, %v667_v6 }
  0xb0   :  { %v670_v17 = vadd.f32 %v669_v58, %v242_v57 }
  0xb1   :  { %v705_v12 = vadd.f32 %v704_v56, %v686_v8 }
  0xb6   :  { %v688_v59 = vpop.f32.mrf.mxu2  ;;  %v244_v61 = vpop.f32.mrf.mxu0 }
  0xb7   :  { %v707_v60 = vpop.f32.mrf.mxu3  ;;  %v671_v62 = vpop.f32.mrf.mxu1  ;;  %v689_v20 = vadd.f32 %v688_v59, %v670_v17 }
  0xb8   :  { %v672_v30 = vadd.f32 %v671_v62, %v244_v61 }
  0xb9   :  { %v708_v25 = vadd.f32 %v707_v60, %v689_v20 }
  0xbe   :  { %v690_v1 = vpop.f32.mrf.mxu2  ;;  %v721_v4 = vpop.f32.mrf.mxu0 }
  0xbf   :  { %v709_v2 = vpop.f32.mrf.mxu3  ;;  %v740_v5 = vpop.f32.mrf.mxu1  ;;  %v722_v7 = vadd.f32 %v721_v4, %v703_v3  ;;  %v691_v34 = vadd.f32 %v690_v1, %v672_v30 }
  0xc1   :  { %v741_v9 = vadd.f32 %v740_v5, %v722_v7  ;;  %v710_v39 = vadd.f32 %v709_v2, %v691_v34 }
  0xc6   :  { %v759_v10 = vpop.f32.mrf.mxu2  ;;  %v723_v15 = vpop.f32.mrf.mxu0 }
  0xc7   :  { %v760_v13 = vadd.f32 %v759_v10, %v741_v9  ;;  %v778_v14 = vpop.f32.mrf.mxu3  ;;  %v742_v16 = vpop.f32.mrf.mxu1  ;;  %v724_v19 = vadd.f32 %v723_v15, %v705_v12 }
  0xc9   :  { %v779_v18 = vadd.f32 %v778_v14, %v760_v13  ;;  %v743_v22 = vadd.f32 %v742_v16, %v724_v19 }
  0xcb   :  { %v812_v21 = vadd.f32 %v795_v11, %v779_v18 }
  0xcd   :  { %v816_v23 = vmax.f32 %v812_v21, 0.0 }
  0xce   :  { %v761_v24 = vpop.f32.mrf.mxu2  ;;  %v726_v28 = vpop.f32.mrf.mxu0 }
  0xcf   :  { %820 = vst [vmem:[%s1573_s5] sm:$0xff] %v816_v23  ;;  %v762_v26 = vadd.f32 %v761_v24, %v743_v22  ;;  %v780_v27 = vpop.f32.mrf.mxu3  ;;  %v727_v32 = vadd.f32 %v726_v28, %v708_v25  ;;  %v745_v33 = vpop.f32.mrf.mxu1 }
  0xd1   :  { %v781_v31 = vadd.f32 %v780_v27, %v762_v26  ;;  %v746_v36 = vadd.f32 %v745_v33, %v727_v32 }
  0xd3   :  { %v813_v35 = vadd.f32 %v800_v29, %v781_v31 }
  0xd5   :  { %v817_v37 = vmax.f32 %v813_v35, 0.0 }
  0xd6   :  { %v764_v38 = vpop.f32.mrf.mxu2  ;;  %v728_v42 = vpop.f32.mrf.mxu0 }
  0xd7   :  { %821 = vst [vmem:[%s1573_s5 + $0x8] sm:$0xff] %v817_v37  ;;  %v765_v40 = vadd.f32 %v764_v38, %v746_v36  ;;  %v783_v41 = vpop.f32.mrf.mxu3  ;;  %v729_v45 = vadd.f32 %v728_v42, %v710_v39  ;;  %v747_v47 = vpop.f32.mrf.mxu1 }
  0xd9   :  { %v784_v44 = vadd.f32 %v783_v41, %v765_v40  ;;  %v748_v49 = vadd.f32 %v747_v47, %v729_v45 }
  0xdb   :  { %v814_v46 = vadd.f32 %v805_v43, %v784_v44 }
  0xdd   :  { %v818_v48 = vmax.f32 %v814_v46, 0.0 }
  0xde   :  { %v766_v50 = vpop.f32.mrf.mxu2 }
  0xdf   :  { %822 = vst [vmem:[%s1573_s5 + $0x10] sm:$0xff] %v818_v48  ;;  %v767_v51 = vadd.f32 %v766_v50, %v748_v49  ;;  %v785_v52 = vpop.f32.mrf.mxu3 }
  0xe1   :  { %v786_v53 = vadd.f32 %v785_v52, %v767_v51 }
  0xe3   :  { %v815_v55 = vadd.f32 %v810_v54, %v786_v53 }
  0xe5   :  { %v819_v56 = vmax.f32 %v815_v55, 0.0 }
  0xe7   :  { %823 = vst [vmem:[%s1573_s5 + $0x18] sm:$0xff] %v819_v56 }

</bundles_post_ra>
